<compile_context>
chip_gen: v5e
topology: v5e:2x2
jax: 0.10.0
libtpu: 0.0.40
codegen_flags: <defaults>
</compile_context>

<pallas_src>
import functools
import numpy as np

import jax
import jax.numpy as jnp
from jax import lax
from jax.experimental import pallas as pl
from jax.experimental.pallas import tpu as pltpu

EPS = 1e-6
MIN_GUARD = 1e30   # added to padded Gaussians' weights so they never win the min


# ----------------------------------------------------------------------------
# Interpolation matrix reproducing torch.nn.functional.interpolate semantics.
# ----------------------------------------------------------------------------
def build_bilinear_matrix(out_size, in_size):
    """Row-interp matrix matching F.interpolate(mode='bilinear', align_corners=False)."""
    U = np.zeros((out_size, in_size), np.float32)
    if in_size == 1:
        U[:, 0] = 1.0
        return U
    scale = in_size / out_size
    for o in range(out_size):
        src = (o + 0.5) * scale - 0.5
        if src < 0.0:
            src = 0.0
        i0 = int(np.floor(src))
        i0 = min(i0, in_size - 1)
        i1 = i0 + 1 if i0 < in_size - 1 else i0
        l1 = src - i0
        U[o, i0] += 1.0 - l1
        U[o, i1] += l1
    return U


def _auto_tile_and_vmem():
    """Pick Gaussian tile + VMEM limit from the chip's VMEM capacity."""
    try:
        info = pltpu.get_tpu_info()
        cap = int(getattr(info, "vmem_capacity_bytes", 0) or 0)
    except Exception:
        cap = 0
    if cap >= 100 * 1024 * 1024:          # v5e / v6e: 128 MiB physical VMEM
        return 32, 96 * 1024 * 1024
    if cap > 0:                            # v7x: 64 MiB physical VMEM per TC
        return 16, 52 * 1024 * 1024
    return 16, 48 * 1024 * 1024            # unknown: conservative


# ----------------------------------------------------------------------------
# Pallas kernel: grid = (view, batch, n_tile).  Streams Gaussians tile_n at a
# time, accumulating per-pixel min / max / sum of the masked weights.
# ----------------------------------------------------------------------------
def _depth_map_kernel(params_ref, u_ref, ut_ref, xh_ref, yh_ref, xf_ref, yf_ref,
                      out_ref, min_acc, max_acc, sum_acc,
                      *, hh, wh, h, w, tile_n, n_real,
                      cutoff_sq, rel_weight, matmul_dtype, has_pad):
    n_idx = pl.program_id(2)
    last_n = pl.num_programs(2) - 1

    @pl.when(n_idx == 0)
    def _init():
        min_acc[...] = jnp.full_like(min_acc, jnp.inf)
        max_acc[...] = jnp.full_like(max_acc, -jnp.inf)
        sum_acc[...] = jnp.zeros_like(sum_acc)

    # params_ref: (tile_n, 8) = [px, py, -a, -(b+c), -d, opacity*importance,
    #                            min_guard, 0].  NOTE: p[:, k][:, None, None]
    # is a per-Gaussian splat; acceptable (~7*tile_n small ops per step).
    p = params_ref[...]
    px = p[:, 0][:, None, None]          # (T,1,1)
    py = p[:, 1][:, None, None]
    na = p[:, 2][:, None, None]          # = -a
    nbpc = p[:, 3][:, None, None]        # = -(b+c)
    nd = p[:, 4][:, None, None]          # = -d
    opimp = p[:, 5][:, None, None]

    # ---- separable Mahalanobis exponent on the half-resolution grid ---------
    xh = xh_ref[...][None, :, :]         # (1,1,wh)  lane coordinate j
    yh = yh_ref[...][None, :, :]         # (1,hh,1)  row  coordinate i
    dx = xh - px                         # (T,1,wh)   small
    dy = yh - py                         # (T,hh,1)   small
    tx2 = na * dx * dx                   # (T,1,wh)
    txc = nbpc * dx                      # (T,1,wh)
    ty2 = nd * dy * dy                   # (T,hh,1)
    expo_half = (txc * dy + tx2) + ty2   # (T,hh,wh)  -> only 3 full-size VALU ops

    # ---- 2x bilinear upsample: one flat x-matmul + batched y-matmul ----------
    eh = expo_half.reshape(tile_n * hh, wh).astype(matmul_dtype)
    cols = jnp.matmul(eh, ut_ref[...], preferred_element_type=jnp.float32)   # (T*hh, w)
    cols = cols.reshape(tile_n, hh, w).astype(matmul_dtype)
    expo = jnp.matmul(u_ref[...], cols, preferred_element_type=jnp.float32)  # (T, h, w)
    # clamp AFTER the upsample, exactly like the reference (the -20 floor does
    # not commute with interpolation).
    expo = jnp.clip(expo, -20.0, 0.0)

    # ---- nearest-upsampled cutoff mask, separable squared distance ----------
    # F.interpolate(mode='nearest') (hh,wh)->(h,w) is out[i,j] = in[i*hh//h, j*wh//w];
    # those half-res coordinates are precomputed in xf/yf.
    xf = xf_ref[...][None, :, :]         # (1,1,w)
    yf = yf_ref[...][None, :, :]         # (1,h,1)
    mdx = xf - px                        # (T,1,w)
    mdy = yf - py                        # (T,h,1)
    inside = (mdx * mdx + mdy * mdy) < cutoff_sq           # (T,h,w)

    wgt = jnp.where(inside, opimp * jnp.exp(expo), 0.0)    # (T,h,w)

    max_acc[...] = jnp.maximum(max_acc[...], jnp.max(wgt, axis=0))
    sum_acc[...] = sum_acc[...] + jnp.sum(wgt, axis=0)

    if has_pad:
        # Padded Gaussians (opimp == 0, guard == MIN_GUARD) only exist in the
        # last Gaussian tile; keep the guard add off the hot path.
        @pl.when(n_idx != last_n)
        def _min_fast():
            min_acc[...] = jnp.minimum(min_acc[...], jnp.min(wgt, axis=0))

        @pl.when(n_idx == last_n)
        def _min_guarded():
            guard = p[:, 6][:, None, None]
            min_acc[...] = jnp.minimum(min_acc[...], jnp.min(wgt + guard, axis=0))
    else:
        min_acc[...] = jnp.minimum(min_acc[...], jnp.min(wgt, axis=0))

    @pl.when(n_idx == last_n)
    def _finalize():
        w_min = min_acc[...]
        w_max = max_acc[...]
        w_sum = sum_acc[...]
        # closed forms of sum_n nw1 and sum_n nw2 (exact up to FP reassociation)
        nw1 = (w_sum - float(n_real) * w_min) / (w_max - w_min + EPS)
        nw2 = w_sum / (w_sum + EPS)
        out_ref[...] = nw1 * rel_weight + nw2               # (h, w)


def pallas_depth_maps(params, u_up, u_up_t, xh, yh, xf, yf, h, w, *,
                      n_real, tile_n, cutoff_sq, rel_weight, matmul_dtype,
                      has_pad, vmem_limit_bytes):
    V, B, n_pad, _ = params.shape
    hh = u_up.shape[1]
    wh = u_up_t.shape[0]
    n_tiles = n_pad // tile_n

    kernel = functools.partial(
        _depth_map_kernel, hh=hh, wh=wh, h=h, w=w, tile_n=tile_n, n_real=n_real,
        cutoff_sq=float(cutoff_sq), rel_weight=float(rel_weight),
        matmul_dtype=matmul_dtype, has_pad=bool(has_pad))

    # NOTE(v7x megacore): the parallel extent here is V*B = 3*B; if B is very
    # small (e.g. 1) one TensorCore may idle part of the run.  A Gaussian-axis
    # split with a JAX-side merge of partial min/max/sum would fix that.
    return pl.pallas_call(
        kernel,
        out_shape=jax.ShapeDtypeStruct((V, B, h, w), jnp.float32),
        grid=(V, B, n_tiles),
        in_specs=[
            pl.BlockSpec((None, None, tile_n, 8), lambda v, b, n: (v, b, n, 0)),
            pl.BlockSpec((h, hh), lambda v, b, n: (0, 0)),   # U   (row upsample)
            pl.BlockSpec((wh, w), lambda v, b, n: (0, 0)),   # U^T (col upsample)
            pl.BlockSpec((1, wh), lambda v, b, n: (0, 0)),   # half-res x coords
            pl.BlockSpec((hh, 1), lambda v, b, n: (0, 0)),   # half-res y coords
            pl.BlockSpec((1, w), lambda v, b, n: (0, 0)),    # nearest x coords
            pl.BlockSpec((h, 1), lambda v, b, n: (0, 0)),    # nearest y coords
        ],
        # Output block index is independent of n -> stays VMEM-resident across
        # the Gaussian reduction; written only on the last n step.
        out_specs=pl.BlockSpec((None, None, h, w), lambda v, b, n: (v, b, 0, 0)),
        scratch_shapes=[
            pltpu.VMEM((h, w), jnp.float32),   # running min
            pltpu.VMEM((h, w), jnp.float32),   # running max
            pltpu.VMEM((h, w), jnp.float32),   # running sum
        ],
        compiler_params=pltpu.CompilerParams(
            dimension_semantics=("parallel", "parallel", "arbitrary"),
            vmem_limit_bytes=int(vmem_limit_bytes)),
    )(params, u_up, u_up_t, xh, yh, xf, yf)


# ----------------------------------------------------------------------------
# Module wrapper (parameter setup + glue in plain JAX).
# ----------------------------------------------------------------------------
class FullGaussianProjectorPallas:
    def __init__(self, hidden_dim, cov3d_hyperparameter, sigma, steps,
                 distance_cutoff, importance_score, relative_normalized_weight,
                 image_size=224, max_gaussians=1000,
                 gaussian_tile=None, upsample_matmul_dtype=jnp.bfloat16,
                 vmem_limit_bytes=None):
        self.image_size = image_size
        self.max_gaussians = max_gaussians
        self.cov3d_hyperparameter = float(cov3d_hyperparameter)
        self.sigma = sigma
        self.steps = steps
        self.distance_cutoff = float(distance_cutoff)
        self.importance_score = importance_score
        self.relative_normalized_weight = float(relative_normalized_weight)
        # squared cutoff for a sqrt-free compare (guard against non-positive cutoff)
        self.cutoff_sq = (self.distance_cutoff * self.distance_cutoff
                          if self.distance_cutoff > 0.0 else -1.0)

        auto_tile, auto_vmem = _auto_tile_and_vmem()
        if gaussian_tile is None:
            gaussian_tile = auto_tile
        # Gaussian-axis tile: multiple of 8 (sublane constraint on the params block).
        self.gaussian_tile = max(8, 8 * ((int(gaussian_tile) + 7) // 8))
        self.vmem_limit_bytes = auto_vmem if vmem_limit_bytes is None else int(vmem_limit_bytes)
        # bf16 MXU path by default: interpolation weights (0.25/0.75/0.5/1.0) are
        # exact in bf16, only the exponent operand is rounded (~0.5% weight error).
        self.upsample_matmul_dtype = upsample_matmul_dtype

        self.Js = jnp.asarray(np.stack([
            np.array([[1, 0, 0], [0, 1, 0]]),
            np.array([[1, 0, 0], [0, 0, 1]]),
            np.array([[0, 0, 1], [0, 1, 0]]),
        ], axis=0).astype(np.float32))
        # nn.Parameter(torch.ones(1, max_gaussians)) -> deterministic ones init
        self.importance = jnp.ones((1, max_gaussians), jnp.float32)

        H = W = image_size
        Hh, Wh = H // 2, W // 2
        Uu = build_bilinear_matrix(H, Hh)                             # (H, Hh)
        self.U_up = jnp.asarray(Uu).astype(self.upsample_matmul_dtype)      # (H, Hh)
        self.U_up_t = jnp.asarray(Uu.T).astype(self.upsample_matmul_dtype)  # (Wh, W) (square)
        self.U_224 = jnp.asarray(build_bilinear_matrix(224, H))      # (224, H) f32

        # Hoisted coordinate grids (constant kernel inputs).
        self.xh = jnp.arange(Wh, dtype=jnp.float32)[None, :]          # (1, Wh)
        self.yh = jnp.arange(Hh, dtype=jnp.float32)[:, None]          # (Hh, 1)
        self.xf = ((jnp.arange(W) * Wh) // W).astype(jnp.float32)[None, :]   # (1, W)
        self.yf = ((jnp.arange(H) * Hh) // H).astype(jnp.float32)[:, None]   # (H, 1)

    def __call__(self, position, cov3d, opacity):
        B, N, _ = position.shape
        H = W = self.image_size
        Wh = W // 2

        if N > self.max_gaussians:
            position = position[:, :self.max_gaussians]
            cov3d = cov3d[:, :self.max_gaussians]
            opacity = opacity[:, :self.max_gaussians]
            N = self.max_gaussians

        imp = jnp.broadcast_to(self.importance[:, :N], (B, N))
        imp = jnp.clip(imp, self.importance_score[0], self.importance_score[1])
        opimp = opacity.astype(jnp.float32) * imp                 # (B, N)

        I3 = jnp.eye(3, dtype=jnp.float32)
        I2 = jnp.eye(2, dtype=jnp.float32)
        cov = cov3d.astype(jnp.float32)
        zeros_bn = jnp.zeros((B, N), jnp.float32)
        params_per_view = []
        for v in range(3):
            J = self.Js[v]                                        # (2, 3)
            # NOTE: cov3d is re-symmetrized / re-normalized each view iteration,
            # exactly as the reference (which reassigns cov3d inside the loop).
            cov = (cov + jnp.swapaxes(cov, -1, -2)) / 2.0
            cov = cov + EPS * I3
            nrm = jnp.linalg.norm(cov, axis=(-1, -2), keepdims=True)
            cov = cov / (nrm + EPS) * self.cov3d_hyperparameter
            cov_inv = jnp.linalg.inv(cov)                         # (B, N, 3, 3)
            cov2d_inv = jnp.einsum('ij,bnjk,lk->bnil', J, cov_inv, J,
                                   precision='highest')
            cov2d_inv = cov2d_inv + I2 * EPS * 1e-4

            proj_xy = jnp.einsum('ij,bnj->bni', J, position, precision='highest')
            min_xy = jnp.min(proj_xy, axis=1, keepdims=True)
            max_xy = jnp.max(proj_xy, axis=1, keepdims=True)
            range_xy = max_xy - min_xy + 1e-6
            min_xy = min_xy - 0.5 * range_xy
            max_xy = max_xy + 0.5 * range_xy
            range_xy = max_xy - min_xy + 1e-6
            proj_norm = (proj_xy - min_xy) / range_xy
            xy_pix = jnp.clip(proj_norm * (Wh - 1), 0.0, Wh - 1)  # (B, N, 2)

            a = cov2d_inv[..., 0, 0]
            bpc = cov2d_inv[..., 0, 1] + cov2d_inv[..., 1, 0]
            dd = cov2d_inv[..., 1, 1]
            # pre-negated quadratic coefficients (folds the kernel's negate away)
            params_per_view.append(
                jnp.stack([xy_pix[..., 0], xy_pix[..., 1], -a, -bpc, -dd, opimp,
                           zeros_bn, zeros_bn], axis=-1))         # (B, N, 8)

        params = jnp.stack(params_per_view, axis=0).astype(jnp.float32)  # (3,B,N,8)

        # Pad the Gaussian axis to a multiple of the tile; padded entries have
        # opacity 0 (no effect on sum/max) and a large min-guard (no effect on min).
        tile_n = min(self.gaussian_tile, ((N + 7) // 8) * 8)
        n_pad = ((N + tile_n - 1) // tile_n) * tile_n
        has_pad = (n_pad != N)
        if has_pad:
            pad_block = jnp.zeros((3, B, n_pad - N, 8), jnp.float32)
            pad_block = pad_block.at[..., 6].set(MIN_GUARD)
            params = jnp.concatenate([params, pad_block], axis=2)

        depth = pallas_depth_maps(
            params, self.U_up, self.U_up_t, self.xh, self.yh, self.xf, self.yf,
            H, W, n_real=N, tile_n=tile_n, cutoff_sq=self.cutoff_sq,
            rel_weight=self.relative_normalized_weight,
            matmul_dtype=self.upsample_matmul_dtype, has_pad=has_pad,
            vmem_limit_bytes=self.vmem_limit_bytes)               # (3, B, H, W)

        # TODO(synk): fill_depth_map() is not defined in the reference source;
        # treated as identity here.
        depth_all = jnp.transpose(depth, (1, 0, 2, 3))            # (B, 3, H, W)

        # bilinear resize to 224x224 (torch align_corners=False semantics)
        t = jnp.einsum('ah,bvhw->bvaw', self.U_224, depth_all, precision='highest')
        d = jnp.einsum('bvaw,cw->bvac', t, self.U_224, precision='highest')

        # global standardization (torch .std() is unbiased -> ddof=1)
        d = (d - jnp.mean(d)) / (jnp.std(d, ddof=1) + EPS)
        return d                                                  # (B, 3, 224, 224)


# ----------------------------------------------------------------------------
if __name__ == "__main__":
    key = jax.random.PRNGKey(0)
    B, N = 2, 8
    image_size = 16

    k1, k2, k3 = jax.random.split(key, 3)
    position = jax.random.normal(k1, (B, N, 3), jnp.float32) * 2.0
    A = jax.random.normal(k2, (B, N, 3, 3), jnp.float32)
    cov3d = jnp.einsum('bnij,bnkj->bnik', A, A) + 0.1 * jnp.eye(3, dtype=jnp.float32)
    opacity = jax.nn.sigmoid(jax.random.normal(k3, (B, N), jnp.float32))

    projector = FullGaussianProjectorPallas(
        hidden_dim=32,
        cov3d_hyperparameter=1.0,
        sigma=1.0,
        steps=3,
        distance_cutoff=4.0,
        importance_score=(0.5, 2.0),
        relative_normalized_weight=0.5,
        image_size=image_size,
        max_gaussians=N,
    )

    out = projector(position, cov3d, opacity)
    out = jax.block_until_ready(out)

    assert out.shape == (B, 3, 224, 224), out.shape
    assert bool(jnp.all(jnp.isfinite(out)))
    print("KERNEL_OK")
</pallas_src>

<mosaic_0001>
module attributes {stable_mosaic.version = 11 : i64} {
  func.func @_depth_map_kernel(%arg0: i32, %arg1: i32, %arg2: i32, %arg3: memref<1x1x8x8xf32, #tpu.memory_space<vmem>>, %arg4: memref<16x8xbf16, #tpu.memory_space<vmem>>, %arg5: memref<8x16xbf16, #tpu.memory_space<vmem>>, %arg6: memref<1x8xf32, #tpu.memory_space<vmem>>, %arg7: memref<8x1xf32, #tpu.memory_space<vmem>>, %arg8: memref<1x16xf32, #tpu.memory_space<vmem>>, %arg9: memref<16x1xf32, #tpu.memory_space<vmem>>, %arg10: memref<1x1x16x16xf32, #tpu.memory_space<vmem>>, %arg11: memref<16x16xf32, #tpu.memory_space<vmem>>, %arg12: memref<16x16xf32, #tpu.memory_space<vmem>>, %arg13: memref<16x16xf32, #tpu.memory_space<vmem>>) attributes {dimension_semantics = [#tpu.dimension_semantics<parallel>, #tpu.dimension_semantics<parallel>, #tpu.dimension_semantics<arbitrary>], iteration_bounds = array<i64: 3, 2, 1>, scalar_prefetch = 0 : i64, scratch_operands = 3 : i64, tpu.core_type = #tpu.core_type<tc>, window_params = [{transform_indices = @transform_0, window_bounds = array<i64: 1, 1, 8, 8>}, {pipeline_mode = #tpu.pipeline_mode<synchronous>, transform_indices = @transform_1, window_bounds = array<i64: 16, 8>}, {pipeline_mode = #tpu.pipeline_mode<synchronous>, transform_indices = @transform_2, window_bounds = array<i64: 8, 16>}, {pipeline_mode = #tpu.pipeline_mode<synchronous>, transform_indices = @transform_3, window_bounds = array<i64: 1, 8>}, {pipeline_mode = #tpu.pipeline_mode<synchronous>, transform_indices = @transform_4, window_bounds = array<i64: 8, 1>}, {pipeline_mode = #tpu.pipeline_mode<synchronous>, transform_indices = @transform_5, window_bounds = array<i64: 1, 16>}, {pipeline_mode = #tpu.pipeline_mode<synchronous>, transform_indices = @transform_6, window_bounds = array<i64: 16, 1>}, {transform_indices = @transform_7, window_bounds = array<i64: 1, 1, 16, 16>}]} {
    %c0_i32 = arith.constant 0 : i32
    %0 = arith.cmpi eq, %arg2, %c0_i32 : i32
    %1 = arith.extui %0 : i1 to i32
    %c0_i32_0 = arith.constant 0 : i32
    %2 = arith.cmpi ne, %1, %c0_i32_0 : i32
    scf.if %2 {
      %cst_38 = arith.constant 0x7F800000 : f32
      %98 = vector.broadcast %cst_38 : f32 to vector<16x16xf32>
      %c0_39 = arith.constant 0 : index
      %c0_40 = arith.constant 0 : index
      %99 = vector.load %arg11[%c0_39, %c0_40] : memref<16x16xf32, #tpu.memory_space<vmem>>, vector<16x16xf32>
      tpu.vector_store %arg11[%c0_39, %c0_40], %98 {strides = array<i32>} : memref<16x16xf32, #tpu.memory_space<vmem>>, vector<16x16xf32>,
      %cst_41 = arith.constant 0xFF800000 : f32
      %100 = vector.broadcast %cst_41 : f32 to vector<16x16xf32>
      %c0_42 = arith.constant 0 : index
      %c0_43 = arith.constant 0 : index
      %101 = vector.load %arg12[%c0_42, %c0_43] : memref<16x16xf32, #tpu.memory_space<vmem>>, vector<16x16xf32>
      tpu.vector_store %arg12[%c0_42, %c0_43], %100 {strides = array<i32>} : memref<16x16xf32, #tpu.memory_space<vmem>>, vector<16x16xf32>,
      %cst_44 = arith.constant 0.000000e+00 : f32
      %102 = vector.broadcast %cst_44 : f32 to vector<16x16xf32>
      %c0_45 = arith.constant 0 : index
      %c0_46 = arith.constant 0 : index
      %103 = vector.load %arg13[%c0_45, %c0_46] : memref<16x16xf32, #tpu.memory_space<vmem>>, vector<16x16xf32>
      tpu.vector_store %arg13[%c0_45, %c0_46], %102 {strides = array<i32>} : memref<16x16xf32, #tpu.memory_space<vmem>>, vector<16x16xf32>,
    } else {
    }
    %c0 = arith.constant 0 : index
    %c0_1 = arith.constant 0 : index
    %c0_2 = arith.constant 0 : index
    %c0_3 = arith.constant 0 : index
    %3 = vector.load %arg3[%c0, %c0_1, %c0_2, %c0_3] : memref<1x1x8x8xf32, #tpu.memory_space<vmem>>, vector<1x1x8x8xf32>
    %4 = vector.shape_cast %3 : vector<1x1x8x8xf32> to vector<8x8xf32>
    %5 = vector.extract_strided_slice %4 {offsets = [0, 0], sizes = [8, 1], strides = [1, 1]} : vector<8x8xf32> to vector<8x1xf32>
    %6 = vector.shape_cast %5 : vector<8x1xf32> to vector<8xf32>
    %7 = vector.shape_cast %6 : vector<8xf32> to vector<8x1x1xf32>
    %8 = vector.extract_strided_slice %4 {offsets = [0, 1], sizes = [8, 1], strides = [1, 1]} : vector<8x8xf32> to vector<8x1xf32>
    %9 = vector.shape_cast %8 : vector<8x1xf32> to vector<8xf32>
    %10 = vector.shape_cast %9 : vector<8xf32> to vector<8x1x1xf32>
    %11 = vector.extract_strided_slice %4 {offsets = [0, 2], sizes = [8, 1], strides = [1, 1]} : vector<8x8xf32> to vector<8x1xf32>
    %12 = vector.shape_cast %11 : vector<8x1xf32> to vector<8xf32>
    %13 = vector.shape_cast %12 : vector<8xf32> to vector<8x1x1xf32>
    %14 = vector.extract_strided_slice %4 {offsets = [0, 3], sizes = [8, 1], strides = [1, 1]} : vector<8x8xf32> to vector<8x1xf32>
    %15 = vector.shape_cast %14 : vector<8x1xf32> to vector<8xf32>
    %16 = vector.shape_cast %15 : vector<8xf32> to vector<8x1x1xf32>
    %17 = vector.extract_strided_slice %4 {offsets = [0, 4], sizes = [8, 1], strides = [1, 1]} : vector<8x8xf32> to vector<8x1xf32>
    %18 = vector.shape_cast %17 : vector<8x1xf32> to vector<8xf32>
    %19 = vector.shape_cast %18 : vector<8xf32> to vector<8x1x1xf32>
    %20 = vector.extract_strided_slice %4 {offsets = [0, 5], sizes = [8, 1], strides = [1, 1]} : vector<8x8xf32> to vector<8x1xf32>
    %21 = vector.shape_cast %20 : vector<8x1xf32> to vector<8xf32>
    %22 = vector.shape_cast %21 : vector<8xf32> to vector<8x1x1xf32>
    %c0_4 = arith.constant 0 : index
    %c0_5 = arith.constant 0 : index
    %23 = vector.load %arg6[%c0_4, %c0_5] : memref<1x8xf32, #tpu.memory_space<vmem>>, vector<1x8xf32>
    %24 = vector.shape_cast %23 : vector<1x8xf32> to vector<1x1x8xf32>
    %c0_6 = arith.constant 0 : index
    %c0_7 = arith.constant 0 : index
    %25 = vector.load %arg7[%c0_6, %c0_7] : memref<8x1xf32, #tpu.memory_space<vmem>>, vector<8x1xf32>
    %26 = vector.shape_cast %25 : vector<8x1xf32> to vector<1x8x1xf32>
    %27 = vector.broadcast %24 : vector<1x1x8xf32> to vector<8x1x8xf32>
    %28 = vector.broadcast %7 : vector<8x1x1xf32> to vector<8x1x8xf32>
    %29 = arith.subf %27, %28 : vector<8x1x8xf32>
    %30 = vector.broadcast %26 : vector<1x8x1xf32> to vector<8x8x1xf32>
    %31 = vector.broadcast %10 : vector<8x1x1xf32> to vector<8x8x1xf32>
    %32 = arith.subf %30, %31 : vector<8x8x1xf32>
    %33 = vector.broadcast %13 : vector<8x1x1xf32> to vector<8x1x8xf32>
    %34 = arith.mulf %33, %29 : vector<8x1x8xf32>
    %35 = arith.mulf %34, %29 : vector<8x1x8xf32>
    %36 = vector.broadcast %16 : vector<8x1x1xf32> to vector<8x1x8xf32>
    %37 = arith.mulf %36, %29 : vector<8x1x8xf32>
    %38 = vector.broadcast %19 : vector<8x1x1xf32> to vector<8x8x1xf32>
    %39 = arith.mulf %38, %32 : vector<8x8x1xf32>
    %40 = arith.mulf %39, %32 : vector<8x8x1xf32>
    %41 = vector.broadcast %37 : vector<8x1x8xf32> to vector<8x8x8xf32>
    %42 = vector.broadcast %32 : vector<8x8x1xf32> to vector<8x8x8xf32>
    %43 = arith.mulf %41, %42 : vector<8x8x8xf32>
    %44 = vector.broadcast %35 : vector<8x1x8xf32> to vector<8x8x8xf32>
    %45 = arith.addf %43, %44 : vector<8x8x8xf32>
    %46 = vector.broadcast %40 : vector<8x8x1xf32> to vector<8x8x8xf32>
    %47 = arith.addf %45, %46 : vector<8x8x8xf32>
    %48 = vector.shape_cast %47 : vector<8x8x8xf32> to vector<64x8xf32>
    %49 = arith.truncf %48 : vector<64x8xf32> to vector<64x8xbf16>
    %c0_8 = arith.constant 0 : index
    %c0_9 = arith.constant 0 : index
    %50 = vector.load %arg5[%c0_8, %c0_9] : memref<8x16xbf16, #tpu.memory_space<vmem>>, vector<8x16xbf16>
    %cst = arith.constant dense<0.000000e+00> : vector<64x16xf32>
    %51 = tpu.matmul %49, %50, %cst {dimension_numbers = #tpu.dot_dimension_numbers<[1], [0], [0], [1], [0, 0, 1, 1], [], []>} : vector<64x8xbf16>, vector<8x16xbf16>, vector<64x16xf32> -> vector<64x16xf32>
    %52 = vector.shape_cast %51 : vector<64x16xf32> to vector<8x8x16xf32>
    %53 = arith.truncf %52 : vector<8x8x16xf32> to vector<8x8x16xbf16>
    %c0_10 = arith.constant 0 : index
    %c0_11 = arith.constant 0 : index
    %54 = vector.load %arg4[%c0_10, %c0_11] : memref<16x8xbf16, #tpu.memory_space<vmem>>, vector<16x8xbf16>
    %cst_12 = arith.constant dense<0.000000e+00> : vector<16x8x16xf32>
    %55 = tpu.matmul %54, %53, %cst_12 {dimension_numbers = #tpu.dot_dimension_numbers<[1], [1], [0], [0, 2], [0, 0, 1, 0, 1, 2], [], []>} : vector<16x8xbf16>, vector<8x8x16xbf16>, vector<16x8x16xf32> -> vector<16x8x16xf32>
    %56 = tpu.transpose %55, [1, 0, 2] : vector<16x8x16xf32> -> vector<8x16x16xf32>
    %cst_13 = arith.constant -2.000000e+01 : f32
    %cst_14 = arith.constant 0.000000e+00 : f32
    %57 = vector.broadcast %cst_13 : f32 to vector<8x16x16xf32>
    %58 = arith.maximumf %57, %56 : vector<8x16x16xf32>
    %59 = vector.broadcast %cst_14 : f32 to vector<8x16x16xf32>
    %60 = arith.minimumf %59, %58 : vector<8x16x16xf32>
    %c0_15 = arith.constant 0 : index
    %c0_16 = arith.constant 0 : index
    %61 = vector.load %arg8[%c0_15, %c0_16] : memref<1x16xf32, #tpu.memory_space<vmem>>, vector<1x16xf32>
    %62 = vector.shape_cast %61 : vector<1x16xf32> to vector<1x1x16xf32>
    %c0_17 = arith.constant 0 : index
    %c0_18 = arith.constant 0 : index
    %63 = vector.load %arg9[%c0_17, %c0_18] : memref<16x1xf32, #tpu.memory_space<vmem>>, vector<16x1xf32>
    %64 = vector.shape_cast %63 : vector<16x1xf32> to vector<1x16x1xf32>
    %65 = vector.broadcast %62 : vector<1x1x16xf32> to vector<8x1x16xf32>
    %66 = vector.broadcast %7 : vector<8x1x1xf32> to vector<8x1x16xf32>
    %67 = arith.subf %65, %66 : vector<8x1x16xf32>
    %68 = vector.broadcast %64 : vector<1x16x1xf32> to vector<8x16x1xf32>
    %69 = vector.broadcast %10 : vector<8x1x1xf32> to vector<8x16x1xf32>
    %70 = arith.subf %68, %69 : vector<8x16x1xf32>
    %71 = arith.mulf %67, %67 : vector<8x1x16xf32>
    %72 = arith.mulf %70, %70 : vector<8x16x1xf32>
    %73 = vector.broadcast %71 : vector<8x1x16xf32> to vector<8x16x16xf32>
    %74 = vector.broadcast %72 : vector<8x16x1xf32> to vector<8x16x16xf32>
    %75 = arith.addf %73, %74 : vector<8x16x16xf32>
    %cst_19 = arith.constant 1.600000e+01 : f32
    %76 = vector.broadcast %cst_19 : f32 to vector<8x16x16xf32>
    %77 = arith.cmpf olt, %75, %76 : vector<8x16x16xf32>
    %78 = math.exp %60 : vector<8x16x16xf32>
    %79 = vector.broadcast %22 : vector<8x1x1xf32> to vector<8x16x16xf32>
    %80 = arith.mulf %79, %78 : vector<8x16x16xf32>
    %cst_20 = arith.constant 0.000000e+00 : f32
    %81 = vector.broadcast %cst_20 : f32 to vector<8x16x16xf32>
    %82 = arith.select %77, %80, %81 : vector<8x16x16xi1>, vector<8x16x16xf32>
    %c0_21 = arith.constant 0 : index
    %c0_22 = arith.constant 0 : index
    %83 = vector.load %arg12[%c0_21, %c0_22] : memref<16x16xf32, #tpu.memory_space<vmem>>, vector<16x16xf32>
    %cst_23 = arith.constant dense<0xFF800000> : vector<16x16xf32>
    %84 = vector.multi_reduction <maximumf>, %82, %cst_23 [0] : vector<8x16x16xf32> to vector<16x16xf32>
    %85 = arith.maximumf %83, %84 : vector<16x16xf32>
    %c0_24 = arith.constant 0 : index
    %c0_25 = arith.constant 0 : index
    %86 = vector.load %arg12[%c0_24, %c0_25] : memref<16x16xf32, #tpu.memory_space<vmem>>, vector<16x16xf32>
    tpu.vector_store %arg12[%c0_24, %c0_25], %85 {strides = array<i32>} : memref<16x16xf32, #tpu.memory_space<vmem>>, vector<16x16xf32>,
    %c0_26 = arith.constant 0 : index
    %c0_27 = arith.constant 0 : index
    %87 = vector.load %arg13[%c0_26, %c0_27] : memref<16x16xf32, #tpu.memory_space<vmem>>, vector<16x16xf32>
    %cst_28 = arith.constant dense<0.000000e+00> : vector<16x16xf32>
    %88 = vector.multi_reduction <add>, %82, %cst_28 [0] : vector<8x16x16xf32> to vector<16x16xf32>
    %89 = arith.addf %87, %88 : vector<16x16xf32>
    %c0_29 = arith.constant 0 : index
    %c0_30 = arith.constant 0 : index
    %90 = vector.load %arg13[%c0_29, %c0_30] : memref<16x16xf32, #tpu.memory_space<vmem>>, vector<16x16xf32>
    tpu.vector_store %arg13[%c0_29, %c0_30], %89 {strides = array<i32>} : memref<16x16xf32, #tpu.memory_space<vmem>>, vector<16x16xf32>,
    %c0_31 = arith.constant 0 : index
    %c0_32 = arith.constant 0 : index
    %91 = vector.load %arg11[%c0_31, %c0_32] : memref<16x16xf32, #tpu.memory_space<vmem>>, vector<16x16xf32>
    %cst_33 = arith.constant dense<0x7F800000> : vector<16x16xf32>
    %92 = vector.multi_reduction <minimumf>, %82, %cst_33 [0] : vector<8x16x16xf32> to vector<16x16xf32>
    %93 = arith.minimumf %91, %92 : vector<16x16xf32>
    %c0_34 = arith.constant 0 : index
    %c0_35 = arith.constant 0 : index
    %94 = vector.load %arg11[%c0_34, %c0_35] : memref<16x16xf32, #tpu.memory_space<vmem>>, vector<16x16xf32>
    tpu.vector_store %arg11[%c0_34, %c0_35], %93 {strides = array<i32>} : memref<16x16xf32, #tpu.memory_space<vmem>>, vector<16x16xf32>,
    %c0_i32_36 = arith.constant 0 : i32
    %95 = arith.cmpi eq, %arg2, %c0_i32_36 : i32
    %96 = arith.extui %95 : i1 to i32
    %c0_i32_37 = arith.constant 0 : i32
    %97 = arith.cmpi ne, %96, %c0_i32_37 : i32
    scf.if %97 {
      %c0_38 = arith.constant 0 : index
      %c0_39 = arith.constant 0 : index
      %98 = vector.load %arg11[%c0_38, %c0_39] : memref<16x16xf32, #tpu.memory_space<vmem>>, vector<16x16xf32>
      %c0_40 = arith.constant 0 : index
      %c0_41 = arith.constant 0 : index
      %99 = vector.load %arg12[%c0_40, %c0_41] : memref<16x16xf32, #tpu.memory_space<vmem>>, vector<16x16xf32>
      %c0_42 = arith.constant 0 : index
      %c0_43 = arith.constant 0 : index
      %100 = vector.load %arg13[%c0_42, %c0_43] : memref<16x16xf32, #tpu.memory_space<vmem>>, vector<16x16xf32>
      %cst_44 = arith.constant 8.000000e+00 : f32
      %101 = vector.broadcast %cst_44 : f32 to vector<16x16xf32>
      %102 = arith.mulf %101, %98 : vector<16x16xf32>
      %103 = arith.subf %100, %102 : vector<16x16xf32>
      %104 = arith.subf %99, %98 : vector<16x16xf32>
      %cst_45 = arith.constant 9.99999997E-7 : f32
      %105 = vector.broadcast %cst_45 : f32 to vector<16x16xf32>
      %106 = arith.addf %104, %105 : vector<16x16xf32>
      %107 = arith.divf %103, %106 : vector<16x16xf32>
      %cst_46 = arith.constant 9.99999997E-7 : f32
      %108 = vector.broadcast %cst_46 : f32 to vector<16x16xf32>
      %109 = arith.addf %100, %108 : vector<16x16xf32>
      %110 = arith.divf %100, %109 : vector<16x16xf32>
      %cst_47 = arith.constant 5.000000e-01 : f32
      %111 = vector.broadcast %cst_47 : f32 to vector<16x16xf32>
      %112 = arith.mulf %107, %111 : vector<16x16xf32>
      %113 = arith.addf %112, %110 : vector<16x16xf32>
      %c0_48 = arith.constant 0 : index
      %c0_49 = arith.constant 0 : index
      %c0_50 = arith.constant 0 : index
      %c0_51 = arith.constant 0 : index
      %114 = vector.load %arg10[%c0_48, %c0_49, %c0_50, %c0_51] : memref<1x1x16x16xf32, #tpu.memory_space<vmem>>, vector<1x1x16x16xf32>
      %115 = vector.shape_cast %114 : vector<1x1x16x16xf32> to vector<16x16xf32>
      %116 = vector.shape_cast %113 : vector<16x16xf32> to vector<1x1x16x16xf32>
      tpu.vector_store %arg10[%c0_48, %c0_49, %c0_50, %c0_51], %116 {strides = array<i32>} : memref<1x1x16x16xf32, #tpu.memory_space<vmem>>, vector<1x1x16x16xf32>,
    } else {
    }
    return
  }
  func.func @transform_0(%arg0: i32, %arg1: i32, %arg2: i32) -> (i32, i32, i32, i32) {
    %c0_i32 = arith.constant 0 : i32
    %c0_i32_0 = arith.constant 0 : i32
    return %arg0, %arg1, %arg2, %c0_i32 : i32, i32, i32, i32
  }
  func.func @transform_1(%arg0: i32, %arg1: i32, %arg2: i32) -> (i32, i32) {
    %c0_i32 = arith.constant 0 : i32
    %c0_i32_0 = arith.constant 0 : i32
    %c0_i32_1 = arith.constant 0 : i32
    return %c0_i32, %c0_i32_0 : i32, i32
  }
  func.func @transform_2(%arg0: i32, %arg1: i32, %arg2: i32) -> (i32, i32) {
    %c0_i32 = arith.constant 0 : i32
    %c0_i32_0 = arith.constant 0 : i32
    %c0_i32_1 = arith.constant 0 : i32
    return %c0_i32, %c0_i32_0 : i32, i32
  }
  func.func @transform_3(%arg0: i32, %arg1: i32, %arg2: i32) -> (i32, i32) {
    %c0_i32 = arith.constant 0 : i32
    %c0_i32_0 = arith.constant 0 : i32
    %c0_i32_1 = arith.constant 0 : i32
    return %c0_i32, %c0_i32_0 : i32, i32
  }
  func.func @transform_4(%arg0: i32, %arg1: i32, %arg2: i32) -> (i32, i32) {
    %c0_i32 = arith.constant 0 : i32
    %c0_i32_0 = arith.constant 0 : i32
    %c0_i32_1 = arith.constant 0 : i32
    return %c0_i32, %c0_i32_0 : i32, i32
  }
  func.func @transform_5(%arg0: i32, %arg1: i32, %arg2: i32) -> (i32, i32) {
    %c0_i32 = arith.constant 0 : i32
    %c0_i32_0 = arith.constant 0 : i32
    %c0_i32_1 = arith.constant 0 : i32
    return %c0_i32, %c0_i32_0 : i32, i32
  }
  func.func @transform_6(%arg0: i32, %arg1: i32, %arg2: i32) -> (i32, i32) {
    %c0_i32 = arith.constant 0 : i32
    %c0_i32_0 = arith.constant 0 : i32
    %c0_i32_1 = arith.constant 0 : i32
    return %c0_i32, %c0_i32_0 : i32, i32
  }
  func.func @transform_7(%arg0: i32, %arg1: i32, %arg2: i32) -> (i32, i32, i32, i32) {
    %c0_i32 = arith.constant 0 : i32
    %c0_i32_0 = arith.constant 0 : i32
    %c0_i32_1 = arith.constant 0 : i32
    return %arg0, %arg1, %c0_i32, %c0_i32_0 : i32, i32, i32, i32
  }
}

</mosaic_0001>

<bundles_post_ra>
// kernel: tpu_custom_call.1
= control target key start
LH: loop header
LB: loop body
LE: loop exit
PB: predicated region body
PF: predicated region fallthrough
CT: control target
= control target key end

     0   :  { %12 = vsyncpa [#allocation6], 0  ;;  %s3836_s0 = inlined_call_operand.hbm [shape: f32[3,2,8,8], index: 0, kind: input, shape index: {}]   ;;  %s3837_s1 = inlined_call_operand.vmem [shape: bf16[16,8], index: 1, kind: input, shape index: {}]   ;;  %s3838_s2 = inlined_call_operand.vmem [shape: bf16[8,16], index: 2, kind: input, shape index: {}]   ;;  %s3839_s3 = inlined_call_operand.vmem [shape: f32[1,8], index: 3, kind: input, shape index: {}]   ;;  %s3840_s4 = inlined_call_operand.vmem [shape: f32[8,1], index: 4, kind: input, shape index: {}]   ;;  %s3841_s5 = inlined_call_operand.vmem [shape: f32[1,16], index: 5, kind: input, shape index: {}]   ;;  %s3842_s6 = inlined_call_operand.vmem [shape: f32[16,1], index: 6, kind: input, shape index: {}]   ;;  %s3843_s7 = inlined_call_operand.hbm [shape: f32[3,2,16,16], index: 7, kind: output, shape index: {}]  }
   0x1   :  { %14 = vsyncpa [#allocation6 + $0x1], 0 }
   0x2   :  { %15 = vsyncpa [#allocation7], 0 }
   0x3   :  { %17 = vsyncpa [#allocation7 + $0x1], 0  ;;  %s2635_s24 = smov 0   ;;  %s2637_s25 = smov 0  }
   0x4   :  { %s2639_s26 = smov 0   ;;  %s2641_s27 = smov 0  }
   0x5   :  { %s2643_s28 = smov 0   ;;  %s2645_s29 = smov 0  }
   0x6   :  { %s2647_s30 = smov 0   ;;  %s2649_s8 = smov 0  }
   0x7 LB: > { %3860 = sst [smem:[#allocation11_spill]] %s2544_s24  ;;  %s2234_s9 = sadd.s32 4294967295, %s2572_s8   ;;  %s2572_s8 = sphi %s2649_s8, %s23_s8   ;;  %s2568_s30 = sphi %s2647_s30, %s3898_s30   ;;  %s2564_s29 = sphi %s2645_s29, %s3897_s29   ;;  %s2560_s28 = sphi %s2643_s28, %s3896_s28   ;;  %s2556_s27 = sphi %s2641_s27, %s3895_s27   ;;  %s2552_s26 = sphi %s2639_s26, %s3894_s26   ;;  %s2548_s25 = sphi %s2637_s25, %s3893_s25   ;;  %s2544_s24 = sphi %s2635_s24, %s3892_s24  }
   0x8   : > { %s2235_s10 = sadd.s32 4294967294, %s2572_s8   ;;  %s38_s11 = sadd.s32 1, %s2564_s29 }
   0x9   : > { %s42_s12 = sadd.s32 1, %s2568_s30  ;;  %p40_p0 = scmp.ge.s32.totalorder %s38_s11, 2 }
   0xa   : > { %s53_s13 = sadd.s32 1, %s2552_s26  ;;  %p60_p1 = scmp.ne.s32.totalorder %s2552_s26, %s2548_s25 }
   0xb   : > { %p61_p2 = scmp.eq.s32.totalorder %s2572_s8, 0  ;;  %s3900_s11 = smov (%p40_p0, %s38_s11), 0 }
   0xc   : > { %3861 = sst [smem:[#allocation12_spill]] %s3900_s11  ;;  %s3902_s12 = smov (!%p40_p0, %s42_s12), %s2568_s30 }
   0xd   : > { %s47_s14 = ssub.s32 %s2564_s29, %s3900_s11  ;;  %p2688_p3 = por %p61_p2, %p60_p1 }
   0xe   : > { %p44_p4 = scmp.ge.s32.totalorder %s3902_s12, 3  ;;  %p66_p5 = scmp.ne.s32.totalorder %s2548_s25, %s2544_s24 }
   0xf   : > { %p67_p6 = scmp.eq.s32.totalorder %s2234_s9, 0  ;;  %p218_p7 = scmp.eq.s32.totalorder %s2234_s9, 5 }
  0x10   : > { %s3904_s12 = smov (%p44_p4, %s3902_s12), 0  ;;  %p224_p10 = scmp.eq.s32.totalorder %s2235_s10, 5 }
  0x11   : > { %3863 = sst [smem:[#allocation13_spill]] %s3904_s12  ;;  %p2696_p8 = por %p67_p6, %p66_p5 }
  0x12   : > { %p2700_p9 = por %p218_p7, %p60_p1  ;;  %s46_s18 = ssub.s32 %s2568_s30, %s3904_s12 }
  0x13   : > { %s48_s19 = sor.u32 %s47_s14, %s46_s18  ;;  %p2706_p12 = por %p224_p10, %p66_p5 }
  0x14   : > { %s3865_s17 = scalar_select %p2700_p9, 1, 0 }
  0x15   : > { %p51_p11 = scmp.eq.s32.totalorder %s48_s19, 0  ;;  %p2274_p13 = scmp.lt.s32.totalorder %s2572_s8, 6 }
  0x16   : > { %3866 = sst [smem:[#allocation14_spill]] %s3865_s17  ;;  %s262_s21 = sand.u32 1, %s2552_s26  }
  0x17   : > { %s3867_s20 = scalar_select %p2706_p12, 1, 0 }
  0x18   : > { %s2713_s22 = scalar_select %p51_p11, %s2552_s26, %s53_s13  }
  0x19   : > { %3868 = sst [smem:[#allocation15_spill]] %s3867_s20  ;;  %s2238_s23 = sshll.u32 %s262_s21, 3 }
  0x1a   : > { %s2239_s9 = sshll.u32 %s2568_s30, 1  ;;  %s266_s24 = scalar_lea.vmem [#allocation5], %s2238_s23 }
  0x1b   : > { %s271_s11 = sadd.s32 %s2564_s29, %s2239_s9  ;;  %s277_s17 = sshll.u32 %s266_s24, 4  ;;  %s278_s17 = int_to_ptr.vmem [resolvable:$true] %s277_s17 }
  0x1c   : > { %s2240_s12 = sshll.u32 %s271_s11, 3  ;;  %p2267_p0 = pnand %p2274_p13, %p2688_p3 }
  0x1d   : > { %s273_s18 = scalar_lea.hbm %s3836_s0, %s2240_s12  ;;  %p2241_p1 = scmp.ge.s32.totalorder %s2572_s8, 1 }
  0x1e   : > { %s275_s19 = sshll.u32 %s273_s18, 4  ;;  %s263_s20 = scalar_lea.sflag [#allocation6], %s262_s21  ;;  %s276_s19 = int_to_ptr.hbm [resolvable:$true] %s275_s19 }
  0x1f   : > { %2269 = dma.hbm_to_vmem [thread:$0]  (!%p2267_p0), %s276_s19, 128, %s278_s17, %s263_s20  }
  0x20   : > { %p282_p2 = scmp.lt.s32.totalorder %s2572_s8, 7 }
  0x22   : > { %p283_p4 = pnand %p2241_p1, %p282_p2 }
  0x24   : > { %286 = sbr.rel (%p283_p4) target bundleno = 1157 (0x485), region = 48 }
  0x29   : > { %s2725_s13 = sand.u32 1, %s2548_s25  }
  0x2a   : > { %s2242_s24 = sshll.u32 %s2725_s13, 3  ;;  %s289_s11 = scalar_lea.sflag [#allocation6], %s2725_s13 }
  0x2b   : > { %s292_s23 = scalar_lea.vmem [#allocation5], %s2242_s24 }
  0x2c   : > { %2535 = dma.done.wait (%p2696_p8), %s289_s11, 128  }
  0x2d   : > { %2537 = vsyncadd (%p2696_p8), %s289_s11, 4294967168  ;;  %v3855_v0 = vmov 0   ;;  %v2575_v1 = vmov 2   ;;  %v2736_v2 = vld [vmem:[%s292_s23] sm:$0xff]  ;;  %s2576_s12 = smov 127   ;;  %v2577_v18 = vmov 3  }
  0x2e   : > { %2361 = vset.pattern.permute.xlu1 %v3855_v0  ;;  %2362 = vset.pattern.permute.xlu2 %v3855_v0  ;;  %v341_v3 = vrot.slane %v2736_v2, 4  ;;  %v339_v4 = vrot.slane %v2736_v2, 2  ;;  %v2741_v5 = vrot.slane %v2736_v2, 6  ;;  %v340_v9 = vrot.slane %v2736_v2, 3  ;;  %v2795_v19 = vld [vmem:[%s3842_s6] sm:$0xff]  ;;  %v2800_v20 = vld [vmem:[%s3842_s6 + $0x8] sm:$0xff] }
  0x2f   : > { %2363 = vset.pattern.permute.xlu0 %v2575_v1  ;;  %v342_v10 = vrot.slane %v2736_v2, 5  ;;  %v344_v11 = vrot.slane %v2736_v2, 7  ;;  %v2765_v15 = vrot.slane %v2736_v2, 1  ;;  %v2769_v16 = vperm.slane %v2736_v2, 0  ;;  %v346_v27 = vld [vmem:[%s3840_s4] sm:$0xff]  ;;  %s2578_s10 = smov 4  }
  0x30   : > { %v2743_v6 = vperm.slane %v341_v3, 0  ;;  %v2745_v7 = vperm.slane %v339_v4, 0  ;;  %v2748_v8 = vperm.slane %v2741_v5, 0  ;;  %v2756_v12 = vperm.slane %v340_v9, 0  ;;  %v2871_v51 = vld [vmem:[%s3839_s3] sm:$0x1] }
  0x31   : > { %v2758_v13 = vperm.slane %v342_v10, 0  ;;  %v2760_v14 = vperm.slane %v344_v11, 0  ;;  %v2772_v17 = vperm.slane %v2765_v15, 0  ;;  %vm757_vm0 = vcmask 1043456   ;;  %s2583_s11 = smov 64   ;;  %s2584_s23 = smov 32  }
  0x32   : > { %411 = vrot.lane.b32.xlu1 %v2743_v6, %s2576_s12  ;;  %407 = vrot.lane.b32.xlu0 %v2745_v7, %s2576_s12  ;;  %vm744_vm1 = vcmask 64512   ;;  %vm801_vm2 = vcmask 1047556   ;;  %vm329_vm3 = vcmask 130048   ;;  %s2586_s15 = smov 16   ;;  %s2587_s16 = smov 80   ;;  %vm1001_vm4 = vcmask 261120  }
  0x33   : > { %415 = vrot.lane.b32.xlu2 %v2748_v8, %s2576_s12  ;;  %s2588_s17 = smov 96   ;;  %s2589_s20 = smov 112   ;;  %vm1004_vm5 = vcmask 392192   ;;  %vm1007_vm6 = vcmask 523264   ;;  %vm1010_vm7 = vcmask 654336   ;;  %vm1013_vm8 = vcmask 785408  }
  0x34   : > { %vm1016_vm9 = vcmask 916480   ;;  %s2254_s24 = sshll.u32 %s2556_s27, 1 }
  0x3a   : > { %409 = vrot.lane.b32.xlu0 %v2756_v12, %s2576_s12  ;;  %413 = vrot.lane.b32.xlu1 %v2758_v13, %s2576_s12 }
  0x3b   : > { %417 = vrot.lane.b32.xlu2 %v2760_v14, %s2576_s12 }
  0x42   : > { %403 = vrot.lane.b32.xlu0 %v2769_v16, %s2576_s12  ;;  %405 = vrot.lane.b32.xlu1 %v2772_v17, %s2576_s12  ;;  %s2585_s12 = smov 48  }
  0x43   : > { %363 = vperm.xlu2 %2362, %v340_v9  }
  0x4a   : > { %358 = vperm.xlu1 %2361, %v339_v4   ;;  %446 = vperm.xlu0 %2363, %v339_v4  }
  0x4b   : > { %2365 = vset.pattern.permute.xlu2 %v2577_v18 }
  0x4c   : > { %502 = vperm.xlu2 %2365, %v339_v4  }
  0x52   : > { %2364 = vset.pattern.permute.xlu1 %v2575_v1  ;;  %461 = vperm.xlu0 %2363, %v342_v10  }
  0x53   : > { %451 = vperm.xlu1 %2364, %v340_v9  }
  0x54   : > { %2368 = vset.pattern.permute.xlu2 %v3855_v0 }
  0x55   : > { %373 = vperm.xlu2 %2368, %v342_v10  }
  0x5a   : > { %2374 = vset.pattern.permute.xlu0 %v2577_v18 }
  0x5b   : > { %2366 = vset.pattern.permute.xlu1 %v2577_v18  ;;  %522 = vperm.xlu0 %2374, %v2741_v5  }
  0x5c   : > { %507 = vperm.xlu1 %2366, %v340_v9  }
  0x5d   : > { %2369 = vset.pattern.permute.xlu2 %v2575_v1 }
  0x5e   : > { %456 = vperm.xlu2 %2369, %v341_v3  }
  0x63   : > { %2375 = vset.pattern.permute.xlu0 %v3855_v0 }
  0x64   : > { %2367 = vset.pattern.permute.xlu1 %v3855_v0 }
  0x65   : > { %368 = vperm.xlu1 %2367, %v341_v3  }
  0x66   : > { %2371 = vset.pattern.permute.xlu2 %v2577_v18 }
  0x67   : > { %517 = vperm.xlu2 %2371, %v342_v10  }
  0x6d   : > { %383 = vperm.xlu1 %2367, %v344_v11  }
  0x6f   : > { %2373 = vset.pattern.permute.xlu2 %v2575_v1 }
  0x70   : > { %471 = vperm.xlu2 %2373, %v344_v11  }
  0x75   : > { %2370 = vset.pattern.permute.xlu1 %v2577_v18 }
  0x76   : > { %512 = vperm.xlu1 %2370, %v341_v3  }
  0x78   : > { %2377 = vset.pattern.permute.xlu2 %v3855_v0 }
  0x7e   : > { %2372 = vset.pattern.permute.xlu1 %v2575_v1 }
  0x7f   : > { %466 = vperm.xlu1 %2372, %v2741_v5  }
  0x87   : > { %2376 = vset.pattern.permute.xlu1 %v2577_v18 }
  0x88   : > { %527 = vperm.xlu1 %2376, %v344_v11  }
  0x8d   : > { %v416_v21 = vpop.permute.xlu2 %415 }
  0x8e   : > { %v2803_v22 = vsub.f32 %v2795_v19, %v416_v21  ;;  %v2806_v23 = vsub.f32 %v2800_v20, %v416_v21  ;;  %v433_v46 = vsub.f32 %v346_v27, %v416_v21 }
  0x90   : > { %2378 = vset.pattern.permute.xlu1 %v3855_v0 }
  0x91   : > { %353 = vperm.xlu1 %2378, %v2765_v15  }
  0x95   : > { %v418_v24 = vpop.permute.xlu2 %417 }
  0x96   : > { %v2811_v25 = vsub.f32 %v2795_v19, %v418_v24  ;;  %v2814_v26 = vsub.f32 %v2800_v20, %v418_v24  ;;  %v434_v34 = vsub.f32 %v346_v27, %v418_v24 }
  0x99   : > { %2379 = vset.pattern.permute.xlu1 %v2575_v1 }
  0x9d   : > { %v2847_v40 = vpop.permute.xlu2 %363 }
  0x9e   : > { %v3853_v53 = vperm.slane %v2847_v40, 0 }
  0xa0   : > { %v390_v57 = vsub.f32 %v2871_v51, %v3853_v53 }
  0xa4   : > { %v412_v28 = vpop.permute.xlu1 %411  ;;  %v2820_v29 = vpop.permute.xlu0 %407 }
  0xa5   : > { %v2822_v30 = vsub.f32 %v346_v27, %v412_v28  ;;  %v2825_v31 = vsub.f32 %v2795_v19, %v412_v28  ;;  %v2828_v32 = vsub.f32 %v2800_v20, %v412_v28  ;;  %v2832_v33 = vsub.f32 %v2800_v20, %v2820_v29 }
  0xa6   : > { %v503_v45 = vpop.permute.xlu2 %502  ;;  %v429_v48 = vsub.f32 %v346_v27, %v2820_v29 }
  0xa7   : > { %563 = vrot.lane.b32.xlu1 %v2822_v30, %s2578_s10  ;;  %v505_v50 = vperm.slane %v503_v45, 0 }
  0xac   : > { %v2836_v35 = vpop.permute.xlu0 %409  ;;  %v414_v36 = vpop.permute.xlu1 %413 }
  0xad   : > { %v430_v37 = vsub.f32 %v346_v27, %v2836_v35  ;;  %v2840_v38 = vsub.f32 %v2795_v19, %v414_v36  ;;  %v2843_v39 = vsub.f32 %v2800_v20, %v414_v36  ;;  %v432_v9 = vsub.f32 %v346_v27, %v414_v36 }
  0xaf   : > { %561 = vrot.lane.b32.xlu0 %v430_v37, %s2578_s10  ;;  %569 = vrot.lane.b32.xlu1 %v434_v34, %s2578_s10  ;;  %v2880_v54 = vpop.permute.xlu2 %373 }
  0xb0   : > { %3869 = vst [vmem:[#allocation16_spill] sm:$0xff] %v2880_v54  ;;  %v3851_v4 = vperm.slane %v2880_v54, 0 }
  0xb2   : > { %v392_v21 = vsub.f32 %v2871_v51, %v3851_v4 }
  0xb4   : > { %v2849_v41 = vpop.permute.xlu0 %403  ;;  %v2851_v42 = vpop.permute.xlu1 %405 }
  0xb5   : > { %v2854_v43 = vsub.f32 %v346_v27, %v2849_v41  ;;  %v2858_v44 = vsub.f32 %v2795_v19, %v2849_v41  ;;  %v2886_v56 = vsub.f32 %v346_v27, %v2851_v42 }
  0xb7   : > { %378 = vperm.xlu0 %2375, %v2741_v5   ;;  %555 = vrot.lane.b32.xlu2 %v2854_v43, %s2578_s10 }
  0xb8   : > { %436 = vperm.xlu1 %2379, %v2736_v2   ;;  %v457_v62 = vpop.permute.xlu2 %456 }
  0xbc   : > { %v2864_v47 = vpop.permute.xlu1 %358  ;;  %v447_v61 = vpop.permute.xlu0 %446 }
  0xbd   : > { %v3854_v49 = vperm.slane %v2864_v47, 0  ;;  %v449_v3 = vperm.slane %v447_v61, 0 }
  0xbf   : > { %567 = vrot.lane.b32.xlu0 %v433_v46, %s2578_s10  ;;  %559 = vrot.lane.b32.xlu2 %v429_v48, %s2578_s10  ;;  %v389_v52 = vsub.f32 %v2871_v51, %v3854_v49 }
  0xc0   : > { %2381 = vset.pattern.permute.xlu1 %v2577_v18 }
  0xc1   : > { %492 = vperm.xlu1 %2381, %v2736_v2   ;;  %v2883_v55 = vmul.f32 %v505_v50, %v389_v52  ;;  %v477_v5 = vmul.f32 %v449_v3, %v389_v52 }
  0xc3   : > { %v2898_v11 = vmul.f32 %v477_v5, %v389_v52 }
  0xc4   : > { %v462_v28 = vpop.permute.xlu0 %461 }
  0xc5   : > { %v452_v58 = vpop.permute.xlu1 %451  ;;  %v464_v45 = vperm.slane %v462_v28, 0 }
  0xc6   : > { %v454_v59 = vperm.slane %v452_v58, 0  ;;  %v459_v58 = vperm.slane %v457_v62, 0 }
  0xc7   : > { %348 = vperm.xlu2 %2377, %v2736_v2   ;;  %557 = vrot.lane.b32.xlu0 %v2886_v56, %s2578_s10  ;;  %v480_v27 = vmul.f32 %v464_v45, %v392_v21 }
  0xc8   : > { %v478_v60 = vmul.f32 %v454_v59, %v390_v57 }
  0xc9   : > { %2384 = vset.pattern.permute.xlu1 %v3855_v0  ;;  %v2909_v52 = vmul.f32 %v480_v27, %v392_v21 }
  0xca   : > { %648 = vperm.xlu1 %2384, %v434_v34   ;;  %v2895_v63 = vmul.f32 %v478_v60, %v390_v57  ;;  %v518_v34 = vpop.permute.xlu2 %517 }
  0xcb   : > { %v520_v50 = vperm.slane %v518_v34, 0 }
  0xcd   : > { %v2907_v36 = vmul.f32 %v520_v50, %v392_v21  ;;  %v2579_v50 = vmov 4  }
  0xce   : > { %v508_v10 = vpop.permute.xlu1 %507 }
  0xcf   : > { %565 = vrot.lane.b32.xlu2 %v432_v9, %s2578_s10  ;;  %632 = vperm.xlu0 %2375, %v430_v37   ;;  %v510_v2 = vperm.slane %v508_v10, 0  ;;  %s2124_s10 = scalar_lea.sflag [#allocation7], %s2725_s13 }
  0xd0   : > { %2380 = vset.pattern.permute.xlu2 %v2575_v1 }
  0xd1   : > { %v2905_v24 = vmul.f32 %v510_v2, %v390_v57 }
  0xd2   : > { %v472_v60 = vpop.permute.xlu2 %471  ;;  %2385 = vset.pattern.permute.xlu1 %v2579_v50 }
  0xd7   : > { %441 = vperm.xlu2 %2380, %v2765_v15   ;;  %640 = vperm.xlu0 %2375, %v432_v9   ;;  %v2912_v37 = vpop.permute.xlu1 %368  ;;  %v474_v9 = vperm.slane %v472_v60, 0 }
  0xd8   : > { %3870 = vst [vmem:[#allocation17_spill] sm:$0xff] %v2912_v37  ;;  %v3852_v1 = vperm.slane %v2912_v37, 0 }
  0xda   : > { %v391_v57 = vsub.f32 %v2871_v51, %v3852_v1 }
  0xdc   : > { %v479_v59 = vmul.f32 %v459_v58, %v391_v57 }
  0xde   : > { %v2918_v61 = vmul.f32 %v479_v59, %v391_v57  ;;  %v523_v59 = vpop.permute.xlu0 %522 }
  0xdf   : > { %2382 = vset.pattern.permute.xlu2 %v2577_v18  ;;  %644 = vperm.xlu0 %2375, %v433_v46   ;;  %v2921_v3 = vpop.permute.xlu1 %383  ;;  %v525_v1 = vperm.slane %v523_v59, 0 }
  0xe0   : > { %3871 = vst [vmem:[#allocation18_spill] sm:$0xff] %v2921_v3  ;;  %497 = vperm.xlu2 %2382, %v2765_v15   ;;  %v3850_v5 = vperm.slane %v2921_v3, 0 }
  0xe2   : > { %v394_v62 = vsub.f32 %v2871_v51, %v3850_v5 }
  0xe4   : > { %v482_v10 = vmul.f32 %v474_v9, %v394_v62 }
  0xe6   : > { %v2928_v2 = vmul.f32 %v482_v10, %v394_v62 }
  0xe7   : > { %2388 = vset.pattern.permute.xlu0 %v2579_v50 }
  0xe8   : > { %2383 = vset.pattern.permute.xlu2 %v3855_v0  ;;  %v513_v21 = vpop.permute.xlu1 %512 }
  0xe9   : > { %628 = vperm.xlu2 %2383, %v429_v48   ;;  %v515_v18 = vperm.slane %v513_v21, 0 }
  0xeb   : > { %v2931_v46 = vmul.f32 %v515_v18, %v391_v57 }
  0xf1   : > { %636 = vperm.xlu2 %2383, %v2822_v30   ;;  %v467_v15 = vpop.permute.xlu1 %466 }
  0xf2   : > { %v469_v4 = vperm.slane %v467_v15, 0 }
  0xf9   : > { %2387 = vset.pattern.permute.xlu2 %v2579_v50 }
  0xfa   : > { %v528_v28 = vpop.permute.xlu1 %527 }
  0xfb   : > { %v530_v34 = vperm.slane %v528_v28, 0 }
  0xfd   : > { %v538_v45 = vmul.f32 %v530_v34, %v394_v62 }
 0x103   : > { %v2934_v27 = vpop.permute.xlu1 %353 }
 0x111   : > { %v556_v58 = vpop.permute.xlu2 %555 }
 0x119   : > { %v560_v60 = vpop.permute.xlu2 %559  ;;  %v564_v9 = vpop.permute.xlu1 %563 }
 0x11a   : > { %v581_v48 = vmul.f32 %v560_v60, %v2745_v7  ;;  %v583_v28 = vmul.f32 %v564_v9, %v2743_v6 }
 0x11c   : > { %v589_v57 = vmul.f32 %v581_v48, %v560_v60  ;;  %v591_v53 = vmul.f32 %v583_v28, %v564_v9 }
 0x11e   : > { %703 = vperm.xlu1 %2385, %v589_v57  }
 0x121   : > { %v2937_v10 = vpop.permute.xlu2 %348  ;;  %v562_v30 = vpop.permute.xlu0 %561 }
 0x122   : > { %v582_v21 = vmul.f32 %v562_v30, %v2756_v12  ;;  %v570_v62 = vpop.permute.xlu1 %569 }
 0x123   : > { %v586_v49 = vmul.f32 %v570_v62, %v2760_v14 }
 0x124   : > { %v590_v18 = vmul.f32 %v582_v21, %v562_v30 }
 0x125   : > { %v594_v59 = vmul.f32 %v586_v49, %v570_v62  ;;  %v3872_v49 = vmov 0  }
 0x126   : > { %708 = vperm.xlu2 %2387, %v590_v18   ;;  %2386 = vset.pattern.permute.xlu1 %v3855_v0  ;;  %v579_v0 = vmul.f32 %v556_v58, %v2769_v16 }
 0x127   : > { %620 = vperm.xlu1 %2386, %v2854_v43  }
 0x128   : > { %v587_v28 = vmul.f32 %v579_v0, %v556_v58  ;;  %v606_v0 = vperm.slane %v2905_v24, 0  ;;  %v607_v24 = vperm.slane %v2931_v46, 0 }
 0x129   : > { %v566_v34 = vpop.permute.xlu2 %565  ;;  %v2943_v5 = vpop.permute.xlu0 %378 }
 0x12a   : > { %v584_v60 = vmul.f32 %v566_v34, %v2758_v13  ;;  %v381_v48 = vperm.slane %v2943_v5, 0  ;;  %v2947_v57 = vpop.permute.xlu1 %436 }
 0x12c   : > { %v592_v30 = vmul.f32 %v584_v60, %v566_v34  ;;  %v393_v21 = vsub.f32 %v2871_v51, %v381_v48 }
 0x12e   : > { %718 = vperm.xlu0 %2388, %v592_v30   ;;  %713 = vperm.xlu2 %2387, %v591_v53   ;;  %v537_v43 = vmul.f32 %v525_v1, %v393_v21  ;;  %v481_v18 = vmul.f32 %v469_v4, %v393_v21 }
 0x12f   : > { %2389 = vset.pattern.permute.xlu1 %v2579_v50  ;;  %v610_v50 = vperm.slane %v538_v45, 0  ;;  %v670_v45 = vperm.slane %v2895_v63, 0  ;;  %v671_v63 = vperm.slane %v2918_v61, 0 }
 0x130   : > { %v489_v3 = vmul.f32 %v481_v18, %v393_v21  ;;  %v674_v18 = vperm.slane %v2928_v2, 0  ;;  %v669_v2 = vperm.slane %v2898_v11, 0 }
 0x131   : > { %v568_v54 = vpop.permute.xlu0 %567  ;;  %v2954_v37 = vpop.permute.xlu2 %441 }
 0x132   : > { %v585_v15 = vmul.f32 %v568_v54, %v2748_v8 }
 0x133   : > { %v2957_v9 = vpop.permute.xlu1 %492 }
 0x134   : > { %v593_v34 = vmul.f32 %v585_v15, %v568_v54  ;;  %v605_v15 = vperm.slane %v2883_v55, 0 }
 0x136   : > { %723 = vperm.xlu1 %2389, %v593_v34   ;;  %693 = vperm.xlu0 %2388, %v587_v28  }
 0x137   : > { %728 = vperm.xlu2 %2387, %v594_v59  }
 0x139   : > { %v558_v53 = vpop.permute.xlu0 %557 }
 0x13a   : > { %v580_v4 = vmul.f32 %v558_v53, %v2772_v17  ;;  %v2960_v1 = vpop.permute.xlu2 %497 }
 0x13c   : > { %v588_v60 = vmul.f32 %v580_v4, %v558_v53  ;;  %v649_v30 = vpop.permute.xlu1 %648  ;;  %v608_v4 = vperm.slane %v2907_v36, 0  ;;  %v743_v36 = vld [vmem:[%s3838_s2] sm:$0xf] }
 0x13d   : > { %v658_v21 = vmul.f32 %v649_v30, %v610_v50  ;;  %v759_v46 = vsel %vm757_vm0, %v743_v36, 0 }
 0x13e   : > { %698 = vperm.xlu1 %2389, %v588_v60   ;;  %v672_v60 = vperm.slane %v2909_v52, 0  ;;  %2260 = vmatpush.bf16.msra.mxu2 %v759_v46 }
 0x13f   : > { %2390 = vset.pattern.permute.xlu2 %v3872_v49  ;;  %v2964_v62 = vadd.f32 %v674_v18, %v658_v21  ;;  %2261 = vmatpush.bf16.msra.mxu3 %v759_v46 }
 0x140   : > { %624 = vperm.xlu2 %2390, %v2886_v56   ;;  %768 = vmatpush.bf16.msra.mxu0 %v759_v46 }
 0x141   : > { %v633_v54 = vpop.permute.xlu0 %632 }
 0x142   : > { %v654_v58 = vmul.f32 %v633_v54, %v606_v0  ;;  %v609_v0 = vperm.slane %v537_v43, 0 }
 0x143   : > { %v629_v59 = vpop.permute.xlu2 %628 }
 0x144   : > { %v653_v28 = vmul.f32 %v629_v59, %v605_v15  ;;  %v686_v34 = vadd.f32 %v670_v45, %v654_v58  ;;  %v673_v58 = vperm.slane %v489_v3, 0  ;;  %v356_v3 = vperm.slane %v2934_v27, 0 }
 0x145   : > { %v3873_v27 = vperm.slane %v2864_v47, 0 }
 0x146   : > { %v685_v53 = vadd.f32 %v669_v2, %v653_v28  ;;  %2391 = vset.pattern.permute.xlu1 %v3872_v49  ;;  %v351_v2 = vperm.slane %v2937_v10, 0 }
 0x149   : > { %v641_v50 = vpop.permute.xlu0 %640 }
 0x14a   : > { %v656_v56 = vmul.f32 %v641_v50, %v608_v4  ;;  %v388_v50 = vsub.f32 %v2871_v51, %v356_v3 }
 0x14b   : > { %v637_v30 = vpop.permute.xlu2 %636 }
 0x14c   : > { %v655_v55 = vmul.f32 %v637_v30, %v607_v24  ;;  %v688_v21 = vadd.f32 %v672_v60, %v656_v56  ;;  %v387_v56 = vsub.f32 %v2871_v51, %v351_v2  ;;  %v495_v30 = vperm.slane %v2957_v9, 0 }
 0x14e   : > { %v687_v18 = vadd.f32 %v671_v63, %v655_v55  ;;  %v500_v55 = vperm.slane %v2960_v1, 0  ;;  %v531_v36 = vmul.f32 %v495_v30, %v387_v56 }
 0x150   : > { %v532_v46 = vmul.f32 %v500_v55, %v388_v50 }
 0x151   : > { %v645_v54 = vpop.permute.xlu0 %644 }
 0x152   : > { %v657_v11 = vmul.f32 %v645_v54, %v609_v0 }
 0x154   : > { %v689_v15 = vadd.f32 %v673_v58, %v657_v11 }
 0x180   : > { %v709_v52 = vpop.permute.xlu2 %708 }
 0x181   : > { %v734_v61 = vadd.f32 %v709_v52, %v686_v34  ;;  %v439_v34 = vperm.slane %v2947_v57, 0 }
 0x183   : > { %v475_v11 = vmul.f32 %v439_v34, %v387_v56 }
 0x185   : > { %v483_v51 = vmul.f32 %v475_v11, %v387_v56 }
 0x188   : > { %v714_v28 = vpop.permute.xlu2 %713 }
 0x189   : > { %v735_v63 = vadd.f32 %v714_v28, %v687_v18 }
 0x190   : > { %v704_v45 = vpop.permute.xlu1 %703 }
 0x191   : > { %v733_v59 = vadd.f32 %v704_v45, %v685_v53  ;;  %v729_v4 = vpop.permute.xlu2 %728  ;;  %v444_v53 = vperm.slane %v2954_v37, 0 }
 0x192   : > { %v738_v37 = vadd.f32 %v729_v4, %v2964_v62 }
 0x193   : > { %v740_v43 = vpack.c.bf16 %v734_v61, %v733_v59  ;;  %v476_v58 = vmul.f32 %v444_v53, %v388_v50  ;;  %v604_v61 = vperm.slane %v532_v46, 0  ;;  %v603_v59 = vperm.slane %v531_v36, 0 }
 0x195   : > { %2245 = vmatmul.msk.bf16.vlgmr.msra.gmra.mxu2 %vm744_vm1, %v740_v43  ;;  %v484_v52 = vmul.f32 %v476_v58, %v388_v50 }
 0x197   : > { %v668_v28 = vperm.slane %v484_v52, 0 }
 0x199   : > { %v621_v24 = vpop.permute.xlu1 %620 }
 0x19a   : > { %v625_v57 = vpop.permute.xlu2 %624  ;;  %v651_v1 = vmul.f32 %v621_v24, %v603_v59 }
 0x19b   : > { %v652_v43 = vmul.f32 %v625_v57, %v604_v61 }
 0x1a0   : > { %v719_v60 = vpop.permute.xlu0 %718 }
 0x1a1   : > { %v736_v0 = vadd.f32 %v719_v60, %v688_v21  ;;  %v667_v21 = vperm.slane %v483_v51, 0  ;;  %v684_v60 = vadd.f32 %v668_v28, %v652_v43  ;;  %v2581_v43 = vmov 1934713408  }
 0x1a3   : > { %v741_v54 = vpack.c.bf16 %v736_v0, %v735_v63  ;;  %v683_v53 = vadd.f32 %v667_v21, %v651_v1  ;;  %v818_v1 = vunpack.c.l.s4 %v2581_v43 }
 0x1a5   : > { %2246 = vmatmul.msk.bf16.gmra.mxu2 %vm744_vm1, %v741_v54 }
 0x1a8   : > { %v724_v45 = vpop.permute.xlu1 %723  ;;  %v694_v34 = vpop.permute.xlu0 %693 }
 0x1a9   : > { %v737_v9 = vadd.f32 %v724_v45, %v689_v15  ;;  %v731_v56 = vadd.f32 %v694_v34, %v683_v53  ;;  %v2580_v15 = vmov 1983009808  }
 0x1aa   : > { %v804_v0 = vunpack.c.l.s4 %v2580_v15 }
 0x1ab   : > { %v742_v18 = vpack.c.bf16 %v738_v37, %v737_v9 }
 0x1ac   : > { %v2997_v58 = vunpack.c.0.s8 %v804_v0 }
 0x1ad   : > { %2247 = vmatmul.msk.bf16.vlgmr.msra.gmra.mxu3 %vm744_vm1, %v742_v18 }
 0x1b0   : > { %v699_v30 = vpop.permute.xlu1 %698 }
 0x1b1   : > { %v732_v50 = vadd.f32 %v699_v30, %v684_v60  ;;  %v3003_v60 = vunpack.c.0.s8 %v818_v1 }
 0x1b3   : > { %v739_v55 = vpack.c.bf16 %v732_v50, %v731_v56 }
 0x1b5   : > { %2244 = vmatmul.msk.bf16.vlgmr.msra.gmra.mxu0 %vm744_vm1, %v739_v55 }
 0x218   : > { %v775_v62 = vpop.f32.mrf.mxu2 }
 0x219   : > { %v792_v46 = vpack.c.bf16 %v775_v62, %v775_v62 }
 0x220   : > { %v777_v4 = vpop.f32.mrf.mxu2 }
 0x228   : > { %v780_v63 = vpop.f32.mrf.mxu2 }
 0x229   : > { %v794_v24 = vpack.c.bf16 %v780_v63, %v780_v63  ;;  %v793_v63 = vpack.c.bf16 %v777_v4, %v777_v4 }
 0x22b   : > { %v800_v51 = vrot.slane %v794_v24, 4 }
 0x230   : > { %v785_v54 = vpop.f32.mrf.mxu3  ;;  %v782_v45 = vpop.f32.mrf.mxu2 }
 0x231   : > { %v796_v11 = vpack.c.bf16 %v785_v54, %v785_v54  ;;  %v795_v18 = vpack.c.bf16 %v782_v45, %v782_v45 }
 0x232   : > { %v770_v36 = vpop.f32.mrf.mxu0 }
 0x233   : > { %v807_v52 = vrot.slane %v796_v11, 4  ;;  %v790_v57 = vpack.c.bf16 %v770_v36, %v770_v36  ;;  %v829_v15 = vrot.slane %v795_v18, 4 }
 0x235   : > { %v808_v37 = vsel %vm801_vm2, %v807_v52, %v792_v46  ;;  %v802_v61 = vsel %vm801_vm2, %v800_v51, %v790_v57 }
 0x236   : > { %v812_v59 = vperm.slane %v808_v37, %v2997_v58  ;;  %v806_v9 = vperm.slane %v802_v61, %v2997_v58 }
 0x238   : > { %v813_v21 = vrot.slane %v812_v59, 4  ;;  %v815_v28 = vrot.slane %v806_v9, 4  ;;  %v787_v34 = vpop.f32.mrf.mxu3 }
 0x239   : > { %v797_v53 = vpack.c.bf16 %v787_v34, %v787_v34 }
 0x23a   : > { %v772_v30 = vpop.f32.mrf.mxu0  ;;  %v814_v56 = vsel %vm801_vm2, %v813_v21, %v806_v9  ;;  %v816_v50 = vsel %vm801_vm2, %v812_v59, %v815_v28 }
 0x23b   : > { %v835_v55 = vrot.slane %v797_v53, 4  ;;  %v791_v62 = vpack.c.bf16 %v772_v30, %v772_v30  ;;  %v820_v0 = vperm.slane %v814_v56, %v3003_v60  ;;  %v824_v24 = vperm.slane %v816_v50, %v3003_v60 }
 0x23d   : > { %v836_v54 = vsel %vm801_vm2, %v835_v55, %v793_v63  ;;  %v830_v11 = vsel %vm801_vm2, %v829_v15, %v791_v62  ;;  %v825_v57 = vrot.slane %v820_v0, 4  ;;  %v827_v45 = vrot.slane %v824_v24, 4 }
 0x23e   : > { %v840_v36 = vperm.slane %v836_v54, %v2997_v58  ;;  %v834_v46 = vperm.slane %v830_v11, %v2997_v58  ;;  %v877_v21 = vshrl.u32 %v824_v24, 16  ;;  %v861_v30 = vshrl.u32 %v820_v0, 16 }
 0x23f   : > { %v826_v9 = vsel %vm801_vm2, 0, %v825_v57  ;;  %v828_v43 = vsel %vm801_vm2, 0, %v827_v45 }
 0x240   : > { %v841_v51 = vrot.slane %v840_v36, 4  ;;  %v843_v52 = vrot.slane %v834_v46, 4  ;;  %v869_v55 = vshrl.u32 %v826_v9, 16  ;;  %v885_v62 = vshrl.u32 %v828_v43, 16 }
 0x242   : > { %v842_v37 = vsel %vm801_vm2, %v841_v51, %v834_v46  ;;  %v844_v4 = vsel %vm801_vm2, %v840_v36, %v843_v52 }
 0x243   : > { %v848_v61 = vperm.slane %v842_v37, %v3003_v60  ;;  %v852_v59 = vperm.slane %v844_v4, %v3003_v60 }
 0x245   : > { %v853_v1 = vrot.slane %v848_v61, 4  ;;  %v855_v18 = vrot.slane %v852_v59, 4  ;;  %v862_v28 = vshrl.u32 %v848_v61, 16  ;;  %v875_v34 = vpack.i.b16 %v852_v59, %v824_v24 }
 0x246   : > { %v878_v53 = vshrl.u32 %v852_v59, 16  ;;  %v859_v54 = vpack.i.b16 %v848_v61, %v820_v0 }
 0x247   : > { %v854_v56 = vsel %vm801_vm2, 0, %v853_v1  ;;  %v856_v50 = vsel %vm801_vm2, 0, %v855_v18  ;;  %v889_v46 = vrot.slane %v875_v34, 4  ;;  %v863_v51 = vpack.i.b16 %v862_v28, %v861_v30 }
 0x248   : > { %v879_v63 = vpack.i.b16 %v878_v53, %v877_v21  ;;  %v883_v15 = vpack.i.b16 %v856_v50, %v828_v43  ;;  %v870_v11 = vshrl.u32 %v854_v56, 16  ;;  %v886_v36 = vshrl.u32 %v856_v50, 16 }
 0x249   : > { %v867_v52 = vpack.i.b16 %v854_v56, %v826_v9  ;;  %v890_v24 = vsel %vm801_vm2, %v889_v46, %v859_v54  ;;  %v2582_v18 = vmov 0.0  }
 0x24a   : > { %v917_v57 = vrot.slane %v879_v63, 4  ;;  %v895_v45 = vrot.slane %v883_v15, 4  ;;  %v887_v37 = vpack.i.b16 %v886_v36, %v885_v62  ;;  %v894_v4 = vperm.slane %v890_v24, %v2997_v58  ;;  %334 = vst.msk [vmem:[#allocation4] sm:$0xff] %vm329_vm3, %v2582_v18 }
 0x24b   : > { %v871_v0 = vpack.i.b16 %v870_v11, %v869_v55  ;;  %335 = vst.msk [vmem:[#allocation4 + $0x8] sm:$0xff] %vm329_vm3, %v2582_v18 }
 0x24c   : > { %v896_v59 = vsel %vm801_vm2, %v895_v45, %v867_v52  ;;  %v918_v1 = vsel %vm801_vm2, %v917_v57, %v863_v51  ;;  %v923_v43 = vrot.slane %v887_v37, 4  ;;  %v903_v21 = vrot.slane %v894_v4, 4 }
 0x24d   : > { %v900_v61 = vperm.slane %v896_v59, %v2997_v58  ;;  %v922_v9 = vperm.slane %v918_v1, %v2997_v58 }
 0x24e   : > { %v924_v28 = vsel %vm801_vm2, %v923_v43, %v871_v0 }
 0x24f   : > { %v931_v34 = vrot.slane %v922_v9, 4  ;;  %v901_v53 = vrot.slane %v900_v61, 4  ;;  %v904_v30 = vsel %vm801_vm2, %v900_v61, %v903_v21  ;;  %v928_v56 = vperm.slane %v924_v28, %v2997_v58 }
 0x250   : > { %v912_v15 = vperm.slane %v904_v30, %v3003_v60  ;;  %v1025_v30 = vperm.slane %v2582_v18, %v2997_v58 }
 0x251   : > { %v902_v50 = vsel %vm801_vm2, %v901_v53, %v894_v4  ;;  %v929_v62 = vrot.slane %v928_v56, 4  ;;  %v932_v55 = vsel %vm801_vm2, %v928_v56, %v931_v34 }
 0x252   : > { %v3035_v63 = vperm.slane %v902_v50, %v3003_v60  ;;  %v940_v54 = vperm.slane %v932_v55, %v3003_v60  ;;  %v915_v59 = vrot.slane %v912_v15, 4 }
 0x253   : > { %v930_v36 = vsel %vm801_vm2, %v929_v62, %v922_v9  ;;  %v960_v62 = vshrl.u32 %v912_v15, 16 }
 0x254   : > { %v913_v11 = vrot.slane %v3035_v63, 4  ;;  %v959_v46 = vpack.i.b16 %v940_v54, %v912_v15  ;;  %v3042_v51 = vperm.slane %v930_v36, %v3003_v60  ;;  %v948_v52 = vshrl.u32 %v3035_v63, 16 }
 0x255   : > { %v943_v57 = vrot.slane %v940_v54, 4  ;;  %v961_v43 = vshrl.u32 %v940_v54, 16  ;;  %v916_v55 = vsel %vm801_vm2, 0, %v915_v59 }
 0x256   : > { %v981_v45 = vunpack.c.l.b16 %v959_v46  ;;  %v914_v37 = vsel %vm801_vm2, 0, %v913_v11  ;;  %v941_v24 = vrot.slane %v3042_v51, 4  ;;  %v949_v4 = vshrl.u32 %v3042_v51, 16 }
 0x257   : > { %v947_v1 = vpack.i.b16 %v3042_v51, %v3035_v63  ;;  %v954_v28 = vshrl.u32 %v914_v37, 16  ;;  %v944_v53 = vsel %vm801_vm2, 0, %v943_v57  ;;  %v962_v54 = vpack.i.b16 %v961_v43, %v960_v62 }
 0x258   : > { %v982_v0 = vpack.c.b16 %v981_v45, %v981_v45  ;;  %v942_v61 = vsel %vm801_vm2, 0, %v941_v24  ;;  %v950_v9 = vpack.i.b16 %v949_v4, %v948_v52  ;;  %v967_v36 = vshrl.u32 %v944_v53, 16 }
 0x259   : > { %v953_v21 = vpack.i.b16 %v942_v61, %v914_v37  ;;  %v955_v34 = vshrl.u32 %v942_v61, 16  ;;  %v966_v45 = vshrl.u32 %v916_v55, 16  ;;  %v965_v37 = vpack.i.b16 %v944_v53, %v916_v55 }
 0x25a   : > { %983 = vrot.lane.b32.xlu2 %v982_v0, %s2583_s11  ;;  %v969_v11 = vunpack.c.l.b16 %v950_v9  ;;  %v1030_v24 = vrot.slane %v1025_v30, 4  ;;  %v985_v18 = vunpack.c.l.b16 %v962_v54  ;;  %v1661_v54 = vsub.f32 %v2800_v20, %v2851_v42 }
 0x25b   : > { %v973_v56 = vunpack.c.l.b16 %v953_v21  ;;  %v956_v50 = vpack.i.b16 %v955_v34, %v954_v28  ;;  %v968_v0 = vpack.i.b16 %v967_v36, %v966_v45  ;;  %v989_v15 = vunpack.c.l.b16 %v965_v37 }
 0x25c   : > { %v970_v4 = vpack.c.b16 %v969_v11, %v969_v11  ;;  %v1032_v59 = vsel %vm801_vm2, %v1025_v30, %v1030_v24  ;;  %v1031_v61 = vsel %vm801_vm2, %v1030_v24, %v1025_v30  ;;  %v986_v43 = vpack.c.b16 %v985_v18, %v985_v18 }
 0x25d   : > { %v974_v46 = vpack.c.b16 %v973_v56, %v973_v56  ;;  %v977_v52 = vunpack.c.l.b16 %v956_v50  ;;  %v993_v9 = vunpack.c.l.b16 %v968_v0  ;;  %v1040_v21 = vperm.slane %v1032_v59, %v3003_v60 }
 0x25e   : > { %v1036_v28 = vperm.slane %v1031_v61, %v3003_v60  ;;  %v990_v34 = vpack.c.b16 %v989_v15, %v989_v15  ;;  %v1659_v11 = vsub.f32 %v2800_v20, %v2849_v41  ;;  %v1660_v36 = vsub.f32 %v2795_v19, %v2851_v42 }
 0x25f   : > { %975 = vrot.lane.b32.xlu0 %v974_v46, %s2584_s23  ;;  %v978_v57 = vpack.c.b16 %v977_v52, %v977_v52  ;;  %v994_v53 = vpack.c.b16 %v993_v9, %v993_v9  ;;  %v1055_v56 = vrot.slane %v1040_v21, 4  ;;  %v1662_v45 = vsub.f32 %v2795_v19, %v2820_v29 }
 0x260   : > { %v1052_v50 = vrot.slane %v1036_v28, 4  ;;  %v1683_v46 = vmul.f32 %v1659_v11, %v1659_v11  ;;  %v1684_v52 = vmul.f32 %v1660_v36, %v1660_v36  ;;  %v1664_v41 = vsub.f32 %v2795_v19, %v2836_v35  ;;  %v3091_v19 = vld [vmem:[%s3841_s5] sm:$0x1] }
 0x261   : > { %979 = vrot.lane.b32.xlu1 %v978_v57, %s2585_s12  ;;  %v1056_v30 = vsel %vm801_vm2, %v1055_v56, %v1040_v21  ;;  %v1057_v55 = vsel %vm801_vm2, %v1040_v21, %v1055_v56  ;;  %v1685_v57 = vmul.f32 %v1661_v54, %v1661_v54  ;;  %v1686_v37 = vmul.f32 %v1662_v45, %v1662_v45  ;;  %v2259_v36 = vld [vmem:[%s3837_s1] sm:$0xff] }
 0x262   : > { %971 = vrot.lane.b32.xlu2 %v970_v4, %s2586_s15  ;;  %v1054_v62 = vsel %vm801_vm2, %v1036_v28, %v1052_v50  ;;  %v1665_v24 = vsub.f32 %v2800_v20, %v2836_v35  ;;  %v1688_v4 = vmul.f32 %v1664_v41, %v1664_v41  ;;  %v1053_v42 = vsel %vm801_vm2, %v1052_v50, %v1036_v28 }
 0x263   : > { %v1651_v35 = vsub.f32 %v3091_v19, %v356_v3  ;;  %v1652_v3 = vsub.f32 %v3091_v19, %v3873_v27  ;;  %v1682_v27 = vmul.f32 %v2858_v44, %v2858_v44 }
 0x264   : > { %v1689_v0 = vmul.f32 %v1665_v24, %v1665_v24 }
 0x267   : > { %987 = vrot.lane.b32.xlu0 %v986_v43, %s2587_s16 }
 0x269   : > { %991 = vrot.lane.b32.xlu1 %v990_v34, %s2588_s17  ;;  %v1675_v34 = vmul.f32 %v1651_v35, %v1651_v35 }
 0x26a   : > { %995 = vrot.lane.b32.xlu2 %v994_v53, %s2589_s20 }
 0x26f   : > { %1065 = vrot.lane.b32.xlu0 %v1054_v62, %s2586_s15 }
 0x271   : > { %1069 = vrot.lane.b32.xlu1 %v1056_v30, %s2584_s23 }
 0x272   : > { %1073 = vrot.lane.b32.xlu2 %v1057_v55, %s2585_s12 }
 0x277   : > { %1077 = vrot.lane.b32.xlu0 %v1053_v42, %s2583_s11 }
 0x279   : > { %1081 = vrot.lane.b32.xlu1 %v1054_v62, %s2587_s16 }
 0x27a   : > { %1085 = vrot.lane.b32.xlu2 %v1056_v30, %s2588_s17 }
 0x27f   : > { %1089 = vrot.lane.b32.xlu0 %v1057_v55, %s2589_s20 }
 0x281   : > { %1729 = vperm.xlu1 %2391, %v1683_v46   ;;  %v3115_v46 = vmul.f32 %v1652_v3, %v1652_v3 }
 0x282   : > { %1734 = vperm.xlu2 %2390, %v1684_v52  }
 0x283   : > { %v1708_v52 = vperm.slane %v3115_v46, 0 }
 0x289   : > { %1739 = vperm.xlu1 %2391, %v1685_v57  }
 0x28a   : > { %1744 = vperm.xlu2 %2390, %v1686_v37  }
 0x291   : > { %1754 = vperm.xlu1 %2391, %v1688_v4   ;;  %v1650_v4 = vsub.f32 %v3091_v19, %v351_v2 }
 0x292   : > { %1759 = vperm.xlu2 %2390, %v1689_v0  }
 0x2b4   : > { %v984_v18 = vpop.permute.xlu2 %983 }
 0x2bc   : > { %v972_v29 = vpop.permute.xlu2 %971 }
 0x2bd   : > { %v1000_v20 = vsel %vm329_vm3, %v947_v1, %v972_v29  ;;  %v1707_v1 = vperm.slane %v1675_v34, 0 }
 0x2c4   : > { %v996_v15 = vpop.permute.xlu2 %995 }
 0x2cc   : > { %v1074_v59 = vpop.permute.xlu2 %1073 }
 0x2d1   : > { %v976_v61 = vpop.permute.xlu0 %975 }
 0x2d2   : > { %v1003_v9 = vsel %vm1001_vm4, %v1000_v20, %v976_v61 }
 0x2d3   : > { %v980_v43 = vpop.permute.xlu1 %979 }
 0x2d4   : > { %v1086_v21 = vpop.permute.xlu2 %1085  ;;  %v1006_v28 = vsel %vm1004_vm5, %v1003_v9, %v980_v43  ;;  %v2590_v43 = vmov 5  }
 0x2d5   : > { %v1009_v53 = vsel %vm1007_vm6, %v1006_v28, %v984_v18  ;;  %v3129_v18 = vmul.f32 %v1650_v4, %v1650_v4  ;;  %2394 = vset.pattern.permute.xlu0 %v2590_v43  ;;  %2393 = vset.pattern.permute.xlu2 %v2590_v43 }
 0x2d6   : > { %2392 = vset.pattern.permute.xlu1 %v2590_v43 }
 0x2d7   : > { %v1706_v29 = vperm.slane %v3129_v18, 0 }
 0x2d9   : > { %v988_v56 = vpop.permute.xlu0 %987 }
 0x2da   : > { %v1012_v63 = vsel %vm1010_vm7, %v1009_v53, %v988_v56 }
 0x2db   : > { %v992_v51 = vpop.permute.xlu1 %991 }
 0x2dc   : > { %v1015_v50 = vsel %vm1013_vm8, %v1012_v63, %v992_v51  ;;  %v1735_v30 = vpop.permute.xlu2 %1734  ;;  %v1691_v63 = vmul.f32 %v2828_v32, %v2828_v32  ;;  %v1697_v32 = vmul.f32 %v2814_v26, %v2814_v26 }
 0x2dd   : > { %v3108_v62 = vadd.f32 %v1735_v30, %v1707_v1  ;;  %v1018_v55 = vsel %vm1016_vm9, %v1015_v50, %v996_v15 }
 0x2de   : > { %v1107_v11 = vsel %vm757_vm0, %v1018_v55, 0 }
 0x2df   : > { %1116 = vmatpush.bf16.msra.mxu1 %v1107_v11  ;;  %v3874_v11 = vperm.slane %v2847_v40, 0  ;;  %vm1820_vm10 = vcmp.lt.f32.partialorder %v3108_v62, 16.0 }
 0x2e1   : > { %v1066_v57 = vpop.permute.xlu0 %1065 }
 0x2e2   : > { %2252 = vmatmul.msk.bf16.vlgmr.msra.gmra.mxu1 %vm744_vm1, %v2259_v36  ;;  %v1092_v37 = vsel %vm329_vm3, %v1053_v42, %v1066_v57  ;;  %v1653_v36 = vsub.f32 %v3091_v19, %v3874_v11 }
 0x2e3   : > { %v1070_v47 = vpop.permute.xlu1 %1069 }
 0x2e4   : > { %v1745_v54 = vpop.permute.xlu2 %1744  ;;  %v1093_v41 = vsel %vm1001_vm4, %v1092_v37, %v1070_v47 }
 0x2e5   : > { %v3121_v45 = vadd.f32 %v1745_v54, %v1708_v52  ;;  %v1094_v24 = vsel %vm1004_vm5, %v1093_v41, %v1074_v59  ;;  %v3875_v54 = vld [vmem:[#allocation17_spill] sm:$0xff] }
 0x2e6   : > { %v3876_v57 = vperm.slane %v3875_v54, 0 }
 0x2e7   : > { %vm1822_vm11 = vcmp.lt.f32.partialorder %v3121_v45, 16.0 }
 0x2e8   : > { %v1654_v37 = vsub.f32 %v3091_v19, %v3876_v57 }
 0x2e9   : > { %v1078_v35 = vpop.permute.xlu0 %1077 }
 0x2ea   : > { %v1095_v59 = vsel %vm1007_vm6, %v1094_v24, %v1078_v35 }
 0x2eb   : > { %v1082_v0 = vpop.permute.xlu1 %1081 }
 0x2ec   : > { %v1096_v10 = vsel %vm1010_vm7, %v1095_v59, %v1082_v0  ;;  %v1677_v59 = vmul.f32 %v1653_v36, %v1653_v36 }
 0x2ed   : > { %v1097_v2 = vsel %vm1013_vm8, %v1096_v10, %v1086_v21 }
 0x2f1   : > { %v1090_v9 = vpop.permute.xlu0 %1089 }
 0x2f2   : > { %v1098_v28 = vsel %vm1016_vm9, %v1097_v2, %v1090_v9  ;;  %v3225_v2 = vmul.f32 %v1654_v37, %v1654_v37 }
 0x2f3   : > { %v1730_v15 = vpop.permute.xlu1 %1729 }
 0x2f4   : > { %v3134_v61 = vadd.f32 %v1730_v15, %v1706_v29 }
 0x2f6   : > { %vm1819_vm13 = vcmp.lt.f32.partialorder %v3134_v61, 16.0 }
 0x2fb   : > { %v1740_v20 = vpop.permute.xlu1 %1739 }
 0x2fc   : > { %v3136_v42 = vadd.f32 %v1740_v20, %v1707_v1 }
 0x2fe   : > { %vm1821_vm12 = vcmp.lt.f32.partialorder %v3136_v42, 16.0 }
 0x303   : > { %v1755_v26 = vpop.permute.xlu1 %1754 }
 0x35f   : > { %v1118_v34 = vpop.f32.mrf.mxu1 }
 0x360   : > { %v3142_v53 = vadd.f32 %v1118_v34, %v1098_v28 }
 0x362   : > { %1137 = vrot.lane.b32.xlu2 %v3142_v53, %s2587_s16  ;;  %1131 = vrot.lane.b32.xlu0 %v3142_v53, %s2588_s17 }
 0x363   : > { %1125 = vrot.lane.b32.xlu1 %v3142_v53, %s2589_s20 }
 0x367   : > { %v1120_v21 = vpop.f32.mrf.mxu1 }
 0x368   : > { %v3156_v56 = vadd.f32 %v1120_v21, %v1098_v28 }
 0x36a   : > { %1155 = vrot.lane.b32.xlu2 %v3142_v53, %s2584_s23  ;;  %1149 = vrot.lane.b32.xlu0 %v3142_v53, %s2585_s12  ;;  %v1281_v11 = vrot.slane %v3156_v56, 4 }
 0x36b   : > { %1143 = vrot.lane.b32.xlu1 %v3142_v53, %s2583_s11 }
 0x372   : > { %1127 = vrot.lane.b32.xlu2 %v3156_v56, %s2589_s20  ;;  %1139 = vrot.lane.b32.xlu0 %v3156_v56, %s2587_s16 }
 0x373   : > { %1161 = vrot.lane.b32.xlu1 %v3142_v53, %s2586_s15 }
 0x37a   : > { %1145 = vrot.lane.b32.xlu2 %v3156_v56, %s2583_s11  ;;  %1157 = vrot.lane.b32.xlu0 %v3156_v56, %s2584_s23  ;;  %s2255_s11 = sshll.u32 %s2560_s28, 2  ;;  %s2243_s28 = sshll.u32 %s2725_s13, 4 }
 0x37b   : > { %1133 = vrot.lane.b32.xlu1 %v3156_v56, %s2588_s17  ;;  %s3758_s27 = sadd.s32 %s2255_s11, %s2254_s24  ;;  %s323_s17 = scalar_lea.vmem [#allocation8], %s2243_s28 }
 0x37c   : > { %s2256_s23 = sshll.u32 %s3758_s27, 3  ;;  %s2138_s20 = sshll.u32 %s323_s17, 4  ;;  %s2139_s20 = int_to_ptr.vmem [resolvable:$true] %s2138_s20 }
 0x37d   : > { %s2137_s16 = scalar_lea.hbm %s3843_s7, %s2256_s23  ;;  %s2494_s11 = scalar_lea.hbm %s3843_s7, 96 }
 0x37e   : > { %s2140_s9 = sshll.u32 %s2137_s16, 4  ;;  %s2141_s9 = int_to_ptr.hbm [resolvable:$true] %s2140_s9 }
 0x37f   : > { %s2488_s14 = sshra.s32 %s2141_s9, 4  ;;  %s2489_s14 = int_to_ptr.hbm [resolvable:$true] %s2488_s14 }
 0x380   : > { %s2490_s18 = scalar_lea.hbm %s2489_s14, 16  ;;  %p2495_p7 = scmp.lt.s32.totalorder %s2489_s14, %s3843_s7 }
 0x381   : > { %p2491_p3 = scmp.ne.s32.totalorder %s2489_s14, %s2490_s18  ;;  %p2496_p8 = scmp.lt.s32.totalorder %s2494_s11, %s2490_s18 }
 0x382   : > { %1163 = vrot.lane.b32.xlu2 %v3156_v56, %s2586_s15  ;;  %1875 = vperm.xlu0 %2394, %v2745_v7   ;;  %v1693_v7 = vmul.f32 %v2843_v39, %v2843_v39 }
 0x383   : > { %1151 = vrot.lane.b32.xlu1 %v3156_v56, %s2585_s12  ;;  %p2492_p5 = pnand %p2491_p3, %p2700_p9  ;;  %p2497_p10 = por %p2496_p8, %p2495_p7 }
 0x385   : > { %p2493_p6 = pneg %p2492_p5 }
 0x387   : > { %p2498_p11 = pnand %p2497_p10, %p2493_p6 }
 0x38a   : > { %1871 = vperm.xlu2 %2393, %v2772_v17   ;;  %1883 = vperm.xlu0 %2394, %v2743_v6   ;;  %v1687_v6 = vmul.f32 %v2832_v33, %v2832_v33  ;;  %v1694_v17 = vmul.f32 %v2803_v22, %v2803_v22  ;;  %v1695_v33 = vmul.f32 %v2806_v23, %v2806_v23 }
 0x38b   : > { %1867 = vperm.xlu1 %2392, %v2769_v16   ;;  %v1692_v16 = vmul.f32 %v2840_v38, %v2840_v38  ;;  %v1696_v38 = vmul.f32 %v2811_v25, %v2811_v25  ;;  %v1169_v25 = vrot.slane %v3142_v53, 4 }
 0x392   : > { %2395 = vset.pattern.permute.xlu2 %v3872_v49  ;;  %2397 = vset.pattern.permute.xlu0 %v3872_v49 }
 0x393   : > { %1879 = vperm.xlu1 %2392, %v2756_v12   ;;  %1769 = vperm.xlu2 %2395, %v1691_v63   ;;  %v1690_v12 = vmul.f32 %v2825_v31, %v2825_v31  ;;  %v3877_v63 = vld [vmem:[#allocation16_spill] sm:$0xff] }
 0x394   : > { %1724 = vperm.xlu0 %2397, %v1682_v27   ;;  %v3878_v27 = vperm.slane %v3877_v63, 0 }
 0x39b   : > { %2396 = vset.pattern.permute.xlu1 %v3872_v49  ;;  %1779 = vperm.xlu2 %2395, %v1693_v7   ;;  %v3235_v7 = vsub.f32 %v3091_v19, %v3878_v27 }
 0x39c   : > { %1749 = vperm.xlu0 %2397, %v1687_v6   ;;  %1774 = vperm.xlu1 %2396, %v1692_v16   ;;  %v3879_v6 = vld [vmem:[#allocation18_spill] sm:$0xff] }
 0x39d   : > { %v3880_v16 = vperm.slane %v3879_v6, 0  ;;  %v1679_v5 = vmul.f32 %v3235_v7, %v3235_v7 }
 0x3a3   : > { %1784 = vperm.xlu2 %2395, %v1694_v17   ;;  %v3240_v17 = vsub.f32 %v3091_v19, %v3880_v16 }
 0x3a4   : > { %1764 = vperm.xlu0 %2397, %v1690_v12   ;;  %2398 = vset.pattern.permute.xlu1 %v2590_v43  ;;  %v1709_v12 = vperm.slane %v1677_v59, 0 }
 0x3a5   : > { %1887 = vperm.xlu1 %2398, %v2758_v13   ;;  %v1760_v13 = vpop.permute.xlu2 %1759 }
 0x3ab   : > { %1799 = vperm.xlu2 %2395, %v1697_v32  }
 0x3ac   : > { %1789 = vperm.xlu0 %2397, %v1695_v33  }
 0x3ad   : > { %2399 = vset.pattern.permute.xlu1 %v3872_v49 }
 0x3ae   : > { %1794 = vperm.xlu1 %2399, %v1696_v38  }
 0x3b3   : > { %2401 = vset.pattern.permute.xlu2 %v2590_v43 }
 0x3b4   : > { %1895 = vperm.xlu2 %2401, %v2760_v14   ;;  %2402 = vset.pattern.permute.xlu0 %v2590_v43 }
 0x3b6   : > { %2400 = vset.pattern.permute.xlu1 %v2590_v43 }
 0x3b7   : > { %1891 = vperm.xlu1 %2400, %v2748_v8  }
 0x3bc   : > { %v1138_v22 = vpop.permute.xlu2 %1137 }
 0x3bd   : > { %v1179_v39 = vrot.slane %v1138_v22, 4 }
 0x3c4   : > { %v1156_v31 = vpop.permute.xlu2 %1155 }
 0x3c5   : > { %v1191_v10 = vrot.slane %v1156_v31, 4 }
 0x3cc   : > { %v3221_v41 = vpop.permute.xlu2 %1127 }
 0x3d4   : > { %v1132_v23 = vpop.permute.xlu0 %1131 }
 0x3d5   : > { %v1167_v44 = vrot.slane %v1132_v23, 4  ;;  %v1126_v3 = vpop.permute.xlu1 %1125  ;;  %v1170_v1 = vsel %vm801_vm2, %v1132_v23, %v1169_v25 }
 0x3d6   : > { %v1181_v51 = vrot.slane %v1126_v3, 4  ;;  %v1180_v49 = vsel %vm801_vm2, %v1179_v39, %v1126_v3  ;;  %v1178_v55 = vperm.slane %v1170_v1, %v2997_v58  ;;  %v1710_v39 = vperm.slane %v3225_v2, 0 }
 0x3d7   : > { %v1168_v14 = vsel %vm801_vm2, %v1167_v44, %v3142_v53  ;;  %v1186_v50 = vperm.slane %v1180_v49, %v2997_v58  ;;  %v3251_v49 = vadd.f32 %v1755_v26, %v1709_v12 }
 0x3d8   : > { %v1182_v8 = vsel %vm801_vm2, %v1138_v22, %v1181_v51  ;;  %v1174_v30 = vperm.slane %v1168_v14, %v2997_v58  ;;  %v1229_v20 = vrot.slane %v1178_v55, 4  ;;  %v3249_v51 = vadd.f32 %v1760_v13, %v1709_v12  ;;  %v3253_v14 = vpop.permute.xlu2 %1145 }
 0x3d9   : > { %v1190_v24 = vperm.slane %v1182_v8, %v2997_v58  ;;  %v1215_v0 = vrot.slane %v1186_v50, 4  ;;  %vm1824_vm4 = vcmp.lt.f32.partialorder %v3251_v49, 16.0 }
 0x3da   : > { %v1217_v15 = vrot.slane %v1174_v30, 4  ;;  %vm1825_vm15 = vcmp.lt.f32.partialorder %v3249_v51, 16.0 }
 0x3db   : > { %v1227_v9 = vrot.slane %v1190_v24, 4  ;;  %v1216_v43 = vsel %vm801_vm2, %v1215_v0, %v1174_v30  ;;  %v1230_v53 = vsel %vm801_vm2, %v1190_v24, %v1229_v20 }
 0x3dc   : > { %v1150_v47 = vpop.permute.xlu0 %1149  ;;  %v1218_v34 = vsel %vm801_vm2, %v1186_v50, %v1217_v15  ;;  %v1222_v33 = vperm.slane %v1216_v43, %v3003_v60  ;;  %v1238_v3 = vperm.slane %v1230_v53, %v3003_v60  ;;  %v1293_v50 = vrot.slane %v3221_v41, 4 }
 0x3dd   : > { %v1144_v4 = vpop.permute.xlu1 %1143  ;;  %v1205_v32 = vrot.slane %v1150_v47, 4  ;;  %v1228_v38 = vsel %vm801_vm2, %v1227_v9, %v1178_v55  ;;  %v1226_v44 = vperm.slane %v1218_v34, %v3003_v60 }
 0x3de   : > { %v1193_v35 = vrot.slane %v1144_v4, 4  ;;  %v1192_v28 = vsel %vm801_vm2, %v1191_v10, %v1144_v4  ;;  %v1234_v30 = vperm.slane %v1228_v38, %v3003_v60  ;;  %v1265_v57 = vrot.slane %v1222_v33, 4 }
 0x3df   : > { %v1198_v22 = vperm.slane %v1192_v28, %v2997_v58  ;;  %v1269_v37 = vrot.slane %v1226_v44, 4  ;;  %v1277_v24 = vrot.slane %v1238_v3, 4 }
 0x3e0   : > { %v1194_v40 = vsel %vm801_vm2, %v1156_v31, %v1193_v35 }
 0x3e1   : > { %v1202_v21 = vperm.slane %v1194_v40, %v2997_v58  ;;  %v1241_v36 = vrot.slane %v1198_v22, 4  ;;  %v1273_v40 = vrot.slane %v1234_v30, 4 }
 0x3e3   : > { %v1253_v1 = vrot.slane %v1202_v21, 4 }
 0x3e4   : > { %v1140_v31 = vpop.permute.xlu0 %1139 }
 0x3e5   : > { %v1162_v23 = vpop.permute.xlu1 %1161  ;;  %v1291_v0 = vrot.slane %v1140_v31, 4  ;;  %v1294_v43 = vsel %vm801_vm2, %v1140_v31, %v1293_v50 }
 0x3e6   : > { %v1203_v25 = vrot.slane %v1162_v23, 4  ;;  %v1206_v19 = vsel %vm801_vm2, %v1162_v23, %v1205_v32 }
 0x3e7   : > { %v1214_v8 = vperm.slane %v1206_v19, %v2997_v58  ;;  %v1292_v16 = vsel %vm801_vm2, %v1291_v0, %v3221_v41 }
 0x3e8   : > { %v1204_v55 = vsel %vm801_vm2, %v1203_v25, %v1150_v47 }
 0x3e9   : > { %v1210_v54 = vperm.slane %v1204_v55, %v2997_v58  ;;  %v1251_v13 = vrot.slane %v1214_v8, 4  ;;  %v1254_v26 = vsel %vm801_vm2, %v1214_v8, %v1253_v1  ;;  %v1164_v1 = vpop.permute.xlu2 %1163  ;;  %v1302_v8 = vperm.slane %v1294_v43, %v2997_v58 }
 0x3ea   : > { %v1262_v4 = vperm.slane %v1254_v26, %v3003_v60 }
 0x3eb   : > { %v1239_v15 = vrot.slane %v1210_v54, 4  ;;  %v1242_v20 = vsel %vm801_vm2, %v1210_v54, %v1241_v36  ;;  %v1252_v35 = vsel %vm801_vm2, %v1251_v13, %v1202_v21  ;;  %v1305_v13 = vrot.slane %v3253_v14, 4 }
 0x3ec   : > { %v1250_v47 = vperm.slane %v1242_v20, %v3003_v60  ;;  %v1258_v59 = vperm.slane %v1252_v35, %v3003_v60  ;;  %v1275_v10 = vrot.slane %v1262_v4, 4  ;;  %v1278_v9 = vsel %vm801_vm2, %v1262_v4, %v1277_v24  ;;  %v1158_v23 = vpop.permute.xlu0 %1157 }
 0x3ed   : > { %v1240_v28 = vsel %vm801_vm2, %v1239_v15, %v1198_v22  ;;  %v1427_v34 = vrot.slane %v1278_v9, 4  ;;  %v1134_v21 = vpop.permute.xlu1 %1133  ;;  %v1339_v0 = vrot.slane %v1302_v8, 4 }
 0x3ee   : > { %v1246_v53 = vperm.slane %v1240_v28, %v3003_v60  ;;  %v1267_v63 = vrot.slane %v1250_v47, 4  ;;  %v1270_v27 = vsel %vm801_vm2, %v1250_v47, %v1269_v37  ;;  %v1271_v6 = vrot.slane %v1258_v59, 4 }
 0x3ef   : > { %v1274_v12 = vsel %vm801_vm2, %v1258_v59, %v1273_v40  ;;  %v1276_v32 = vsel %vm801_vm2, %v1275_v10, %v1238_v3  ;;  %v1403_v38 = vrot.slane %v1270_v27, 4  ;;  %v1315_v37 = vrot.slane %v1164_v1, 4 }
 0x3f0   : > { %v1263_v31 = vrot.slane %v1246_v53, 4  ;;  %v1266_v22 = vsel %vm801_vm2, %v1246_v53, %v1265_v57  ;;  %v3278_v25 = vsel %vm801_vm2, %v1267_v63, %v1226_v44  ;;  %v1272_v19 = vsel %vm801_vm2, %v1271_v6, %v1234_v30 }
 0x3f1   : > { %v1391_v50 = vrot.slane %v3278_v25, 4  ;;  %v1404_v41 = vsel %vm801_vm2, %v1403_v38, %v1266_v22  ;;  %v1415_v55 = vrot.slane %v1276_v32, 4  ;;  %v1428_v54 = vsel %vm801_vm2, %v1427_v34, %v1274_v12 }
 0x3f2   : > { %v3285_v3 = vsel %vm801_vm2, %v1263_v31, %v1222_v33  ;;  %v3288_v36 = vperm.slane %v1404_v41, %v2997_v58  ;;  %v1303_v44 = vrot.slane %v1158_v23, 4  ;;  %v1298_v30 = vperm.slane %v1292_v16, %v2997_v58 }
 0x3f3   : > { %v1416_v26 = vsel %vm801_vm2, %v1415_v55, %v1272_v19  ;;  %v1429_v57 = vrot.slane %v1274_v12, 4  ;;  %v1405_v24 = vrot.slane %v1266_v22, 4  ;;  %v3298_v33 = vperm.slane %v1428_v54, %v2997_v58 }
 0x3f4   : > { %v3295_v4 = vperm.slane %v1416_v26, %v2997_v58  ;;  %v1417_v15 = vrot.slane %v1272_v19, 4  ;;  %v1392_v20 = vsel %vm801_vm2, %v1391_v50, %v3285_v3  ;;  %v1439_v35 = vrot.slane %v3288_v36, 4 }
 0x3f5   : > { %v1430_v47 = vsel %vm801_vm2, %v1278_v9, %v1429_v57  ;;  %v1463_v59 = vrot.slane %v3298_v33, 4  ;;  %v3306_v10 = vperm.slane %v1392_v20, %v2997_v58  ;;  %v1304_v40 = vsel %vm801_vm2, %v1303_v44, %v3253_v14  ;;  %v1152_v14 = vpop.permute.xlu1 %1151 }
 0x3f6   : > { %v1327_v43 = vrot.slane %v1298_v30, 4  ;;  %v1306_v28 = vsel %vm801_vm2, %v1158_v23, %v1305_v13  ;;  %v1279_v34 = vrot.slane %v1134_v21, 4  ;;  %v1282_v53 = vsel %vm801_vm2, %v1134_v21, %v1281_v11 }
 0x3f7   : > { %v3315_v63 = vsel %vm801_vm2, %v1270_v27, %v1405_v24  ;;  %v1440_v9 = vsel %vm801_vm2, %v1439_v35, %v3306_v10  ;;  %v1464_v6 = vsel %vm801_vm2, %v1463_v59, %v3295_v4  ;;  %v1290_v16 = vperm.slane %v1282_v53, %v2997_v58 }
 0x3f8   : > { %v3323_v12 = vsel %vm801_vm2, %v1276_v32, %v1417_v15  ;;  %v3326_v38 = vperm.slane %v1430_v47, %v2997_v58  ;;  %v3329_v11 = vperm.slane %v1440_v9, %v3003_v60  ;;  %v1310_v27 = vperm.slane %v1304_v40, %v2997_v58  ;;  %v3353_v40 = vpop.permute.xlu2 %1871 }
 0x3f9   : > { %v1314_v21 = vperm.slane %v1306_v28, %v2997_v58  ;;  %v1280_v23 = vsel %vm801_vm2, %v1279_v34, %v3156_v56  ;;  %v1340_v31 = vsel %vm801_vm2, %v1339_v0, %v1290_v16  ;;  %v1341_v22 = vrot.slane %v1290_v16, 4 }
 0x3fa   : > { %v3337_v19 = vperm.slane %v1464_v6, %v3003_v60  ;;  %v1489_v32 = vrot.slane %v3329_v11, 4  ;;  %v1286_v50 = vperm.slane %v1280_v23, %v2997_v58  ;;  %v1316_v41 = vsel %vm801_vm2, %v1315_v37, %v1152_v14 }
 0x3fb   : > { %v1342_v55 = vsel %vm801_vm2, %v1302_v8, %v1341_v22  ;;  %v1346_v54 = vperm.slane %v1340_v31, %v3003_v60  ;;  %v1317_v44 = vrot.slane %v1152_v14, 4  ;;  %v1322_v13 = vperm.slane %v1316_v41, %v2997_v58  ;;  %v3362_v22 = vpop.permute.xlu0 %1875 }
 0x3fc   : > { %v1490_v56 = vsel %vm801_vm2, %v3337_v19, %v1489_v32  ;;  %v1353_v26 = vrot.slane %v1310_v27, 4  ;;  %v1328_v57 = vsel %vm801_vm2, %v1327_v43, %v1286_v50  ;;  %v1329_v24 = vrot.slane %v1286_v50, 4 }
 0x3fd   : > { %v1617_v0 = vmax.f32 %v1490_v56, -20.0  ;;  %v1365_v15 = vrot.slane %v1314_v21, 4  ;;  %v1334_v20 = vperm.slane %v1328_v57, %v3003_v60  ;;  %v1318_v37 = vsel %vm801_vm2, %v1164_v1, %v1317_v44 }
 0x3fe   : > { %v1330_v8 = vsel %vm801_vm2, %v1298_v30, %v1329_v24  ;;  %v1350_v35 = vperm.slane %v1342_v55, %v3003_v60  ;;  %v1326_v47 = vperm.slane %v1318_v37, %v2997_v58  ;;  %v1351_v59 = vrot.slane %v1322_v13, 4 }
 0x3ff   : > { %v1633_v28 = vmin.f32 %v1617_v0, 0.0  ;;  %v1338_v34 = vperm.slane %v1330_v8, %v3003_v60  ;;  %v1385_v43 = vrot.slane %v1346_v54, 4  ;;  %v1354_v53 = vsel %vm801_vm2, %v1322_v13, %v1353_v26 }
 0x400   : > { %v1352_v9 = vsel %vm801_vm2, %v1351_v59, %v1310_v27  ;;  %v1362_v6 = vperm.slane %v1354_v53, %v3003_v60  ;;  %v1363_v1 = vrot.slane %v1326_v47, 4  ;;  %v1366_v30 = vsel %vm801_vm2, %v1326_v47, %v1365_v15 }
 0x401   : > { %v1838_v16 = vmul.f32 1.442695, %v1633_v28  ;;  %v1377_v14 = vrot.slane %v1334_v20, 4  ;;  %v1358_v23 = vperm.slane %v1352_v9, %v3003_v60  ;;  %v1374_v31 = vperm.slane %v1366_v30, %v3003_v60 }
 0x402   : > { %v1381_v32 = vrot.slane %v1338_v34, 4  ;;  %v1389_v50 = vrot.slane %v1350_v35, 4  ;;  %v1364_v41 = vsel %vm801_vm2, %v1363_v1, %v1314_v21  ;;  %v1379_v55 = vrot.slane %v1362_v6, 4 }
 0x403   : > { %2403 = vpow2.f32 %v1838_v16  ;;  %v1370_v27 = vperm.slane %v1364_v41, %v3003_v60  ;;  %v1375_v44 = vrot.slane %v1358_v23, 4  ;;  %v1378_v13 = vsel %vm801_vm2, %v1358_v23, %v1377_v14  ;;  %v1770_v14 = vpop.permute.xlu2 %1769 }
 0x404   : > { %v1380_v56 = vsel %vm801_vm2, %v1379_v55, %v1338_v34  ;;  %v1382_v26 = vsel %vm801_vm2, %v1362_v6, %v1381_v32  ;;  %v1387_v57 = vrot.slane %v1374_v31, 4  ;;  %v1390_v24 = vsel %vm801_vm2, %v1374_v31, %v1389_v50 }
 0x405   : > { %v1376_v0 = vsel %vm801_vm2, %v1375_v44, %v1334_v20  ;;  %v1383_v15 = vrot.slane %v1370_v27, 4  ;;  %v1503_v21 = vrot.slane %v1380_v56, 4  ;;  %v1441_v37 = vrot.slane %v3306_v10, 4 }
 0x406   : > { %v1388_v8 = vsel %vm801_vm2, %v1387_v57, %v1350_v35  ;;  %v1505_v47 = vrot.slane %v1376_v0, 4  ;;  %v1515_v59 = vrot.slane %v1382_v26, 4  ;;  %v1517_v28 = vrot.slane %v1378_v13, 4 }
 0x407   : > { %v1384_v53 = vsel %vm801_vm2, %v1383_v15, %v1346_v54  ;;  %v1386_v34 = vsel %vm801_vm2, %v1370_v27, %v1385_v43  ;;  %v1527_v9 = vrot.slane %v1388_v8, 4  ;;  %v1539_v6 = vrot.slane %v1390_v24, 4 }
 0x408   : > { %v1504_v1 = vsel %vm801_vm2, %v1503_v21, %v1376_v0  ;;  %v1506_v30 = vsel %vm801_vm2, %v1380_v56, %v1505_v47  ;;  %v1516_v20 = vsel %vm801_vm2, %v1515_v59, %v1378_v13  ;;  %v1518_v16 = vsel %vm801_vm2, %v1382_v26, %v1517_v28  ;;  %v3401_v13 = vpop.permute.xlu0 %1883 }
 0x409   : > { %v2404_v10 = vpop.eup %2403  ;;  %v1393_v35 = vrot.slane %v3285_v3, 4  ;;  %v3382_v23 = vperm.slane %v1506_v30, %v2997_v58  ;;  %v1522_v54 = vperm.slane %v1516_v20, %v2997_v58  ;;  %v3386_v43 = vperm.slane %v1518_v16, %v2997_v58 }
 0x40a   : > { %v3390_v31 = vperm.slane %v3315_v63, %v2997_v58  ;;  %v3394_v32 = vperm.slane %v3323_v12, %v2997_v58  ;;  %v1465_v50 = vrot.slane %v3295_v4, 4  ;;  %v1900_v3 = vmul.f32 %v2404_v10, %v3353_v40 }
 0x40b   : > { %v1510_v41 = vperm.slane %v1504_v1, %v2997_v58  ;;  %v1528_v55 = vsel %vm801_vm2, %v1527_v9, %v1384_v53  ;;  %v1540_v27 = vsel %vm801_vm2, %v1539_v6, %v1386_v34  ;;  %v1551_v44 = vrot.slane %v1522_v54, 4  ;;  %v3521_v46 = vpop.permute.xlu2 %1779 }
 0x40c   : > { %v1475_v63 = vrot.slane %v3326_v38, 4  ;;  %v3406_v56 = vadd.f32 %v1770_v14, %v1710_v39  ;;  %v1529_v12 = vrot.slane %v1384_v53, 4  ;;  %v1442_v4 = vsel %vm801_vm2, %v3288_v36, %v1441_v37 }
 0x40d   : > { %v3412_v26 = vsel %vm1820_vm10, %v1900_v3, 0.0  ;;  %v1541_v57 = vrot.slane %v1386_v34, 4  ;;  %v1563_v0 = vrot.slane %v3386_v43, 4  ;;  %v1565_v15 = vrot.slane %v3382_v23, 4 }
 0x40e   : > { %v3417_v21 = vperm.slane %v1442_v4, %v3003_v60  ;;  %v1466_v47 = vsel %vm801_vm2, %v3298_v33, %v1465_v50  ;;  %v1534_v59 = vperm.slane %v1528_v55, %v2997_v58  ;;  %v1546_v28 = vperm.slane %v1540_v27, %v2997_v58 }
 0x40f   : > { %v3424_v36 = vperm.slane %v1466_v47, %v3003_v60  ;;  %v1553_v62 = vrot.slane %v1510_v41, 4  ;;  %v1552_v37 = vsel %vm801_vm2, %v1551_v44, %v1510_v41  ;;  %v1487_v53 = vrot.slane %v3337_v19, 4 }
 0x410   : > { %v1530_v34 = vsel %vm801_vm2, %v1388_v8, %v1529_v12  ;;  %v1577_v9 = vrot.slane %v1534_v59, 4  ;;  %v1558_v6 = vperm.slane %v1552_v37, %v3003_v60  ;;  %v1575_v1 = vrot.slane %v1546_v28, 4  ;;  %v1725_v4 = vpop.permute.xlu0 %1724 }
 0x411   : > { %v1491_v33 = vrot.slane %v3424_v36, 4  ;;  %v1554_v30 = vsel %vm801_vm2, %v1522_v54, %v1553_v62  ;;  %v1488_v20 = vsel %vm801_vm2, %v1487_v53, %v3329_v11  ;;  %v1394_v16 = vsel %vm801_vm2, %v3278_v25, %v1393_v35 }
 0x412   : > { %v1542_v10 = vsel %vm801_vm2, %v1390_v24, %v1541_v57  ;;  %v1578_v19 = vsel %vm801_vm2, %v1546_v28, %v1577_v9  ;;  %v1576_v8 = vsel %vm801_vm2, %v1575_v1, %v1534_v59  ;;  %v1601_v14 = vrot.slane %v1558_v6, 4  ;;  %v3449_v59 = vpop.permute.xlu1 %1867 }
 0x413   : > { %v1492_v50 = vsel %vm801_vm2, %v1491_v33, %v3417_v21  ;;  %v1586_v3 = vperm.slane %v1578_v19, %v3003_v60  ;;  %v1582_v54 = vperm.slane %v1576_v8, %v3003_v60  ;;  %v1615_v41 = vmax.f32 %v1488_v20, -20.0 }
 0x414   : > { %v1562_v11 = vperm.slane %v1554_v30, %v3003_v60  ;;  %v1619_v55 = vmax.f32 %v1492_v50, -20.0  ;;  %v3445_v25 = vperm.slane %v1394_v16, %v2997_v58  ;;  %v1451_v24 = vrot.slane %v3390_v31, 4 }
 0x415   : > { %v1603_v35 = vrot.slane %v1586_v3, 4  ;;  %v1599_v27 = vrot.slane %v1582_v54, 4  ;;  %v1602_v44 = vsel %vm801_vm2, %v1582_v54, %v1601_v14  ;;  %v1631_v12 = vmin.f32 %v1615_v41, 0.0 }
 0x416   : > { %v1635_v57 = vmin.f32 %v1619_v55, 0.0  ;;  %v1618_v47 = vmax.f32 %v1602_v44, -20.0  ;;  %v1452_v28 = vsel %vm801_vm2, %v1451_v24, %v3445_v25  ;;  %v1476_v62 = vsel %vm801_vm2, %v1475_v63, %v3394_v32 }
 0x417   : > { %v3456_v37 = vperm.slane %v1542_v10, %v2997_v58  ;;  %v1604_v53 = vsel %vm801_vm2, %v1603_v35, %v1562_v11  ;;  %v1600_v9 = vsel %vm801_vm2, %v1599_v27, %v1558_v6  ;;  %v1834_v1 = vmul.f32 1.442695, %v1631_v12 }
 0x418   : > { %v1620_v33 = vmax.f32 %v1604_v53, -20.0  ;;  %v1842_v30 = vmul.f32 1.442695, %v1635_v57  ;;  %v1616_v20 = vmax.f32 %v1600_v9, -20.0  ;;  %v1634_v16 = vmin.f32 %v1618_v47, 0.0  ;;  %v1750_v53 = vpop.permute.xlu0 %1749 }
 0x419   : > { %2405 = vpow2.f32 %v1834_v1  ;;  %v3461_v19 = vperm.slane %v1452_v28, %v3003_v60  ;;  %v3464_v8 = vperm.slane %v1476_v62, %v3003_v60  ;;  %v3467_v63 = vperm.slane %v1530_v34, %v2997_v58 }
 0x41a   : > { %v1636_v10 = vmin.f32 %v1620_v33, 0.0  ;;  %2407 = vpow2.f32 %v1842_v30  ;;  %v1632_v6 = vmin.f32 %v1616_v20, 0.0  ;;  %v1840_v14 = vmul.f32 1.442695, %v1634_v16  ;;  %v3499_v30 = vpop.permute.xlu1 %1879 }
 0x41b   : > { %v3472_v50 = vsel %vm329_vm3, %v3412_v26, -inf  ;;  %v1495_v54 = vrot.slane %v3464_v8, 4  ;;  %v1587_v41 = vrot.slane %v3456_v37, 4  ;;  %v1493_v55 = vrot.slane %v3417_v21, 4 }
 0x41c   : > { %v1844_v58 = vmul.f32 1.442695, %v1636_v10  ;;  %v1836_v34 = vmul.f32 1.442695, %v1632_v6  ;;  %2409 = vpow2.f32 %v1840_v14  ;;  %v1605_v24 = vrot.slane %v1562_v11, 4 }
 0x41d   : > { %v1496_v35 = vsel %vm801_vm2, %v1495_v54, %v3461_v19  ;;  %v1564_v27 = vsel %vm801_vm2, %v1563_v0, %v3382_v23  ;;  %v1588_v44 = vsel %vm801_vm2, %v1587_v41, %v3467_v63  ;;  %v1494_v21 = vsel %vm801_vm2, %v3424_v36, %v1493_v55 }
 0x41e   : > { %2411 = vpow2.f32 %v1844_v58  ;;  %v3489_v12 = vperm.slane %v1588_v44, %v3003_v60  ;;  %v1623_v57 = vmax.f32 %v1496_v35, -20.0  ;;  %v1606_v11 = vsel %vm801_vm2, %v1586_v3, %v1605_v24 }
 0x41f   : > { %v2406_v47 = vpop.eup %2405  ;;  %v1969_v28 = vsel %vm329_vm3, %v3412_v26, 0.0  ;;  %2413 = vpow2.f32 %v1836_v34  ;;  %v1622_v0 = vmax.f32 %v1606_v11, -20.0  ;;  %v1621_v62 = vmax.f32 %v1494_v21, -20.0 }
 0x420   : > { %v2408_v9 = vpop.eup %2407  ;;  %v3496_v36 = vperm.slane %v1564_v27, %v3003_v60  ;;  %v1607_v1 = vrot.slane %v3489_v12, 4  ;;  %v1639_v33 = vmin.f32 %v1623_v57, 0.0  ;;  %v1802_v3 = vadd.f32 %v1725_v4, %v1706_v29 }
 0x421   : > { %v3505_v20 = vsel %vm329_vm3, %v3412_v26, inf  ;;  %v1902_v16 = vmul.f32 %v2408_v9, %v3362_v22  ;;  %v1898_v10 = vmul.f32 %v2406_v47, %v3449_v59  ;;  %v1638_v6 = vmin.f32 %v1622_v0, 0.0 }
 0x422   : > { %v2410_v14 = vpop.eup %2409  ;;  %v1608_v54 = vsel %vm801_vm2, %v1607_v1, %v3496_v36  ;;  %v1850_v41 = vmul.f32 1.442695, %v1639_v33  ;;  %v1637_v55 = vmin.f32 %v1621_v62, 0.0  ;;  %v1807_v58 = vadd.f32 %v1750_v53, %v1708_v52 }
 0x423   : > { %v1918_v18 = vsel %vm1822_vm11, %v1902_v16, 0.0  ;;  %v1901_v29 = vmul.f32 %v2410_v14, %v3353_v40  ;;  %v1624_v26 = vmax.f32 %v1608_v54, -20.0  ;;  %v1848_v4 = vmul.f32 1.442695, %v1638_v6  ;;  %v3552_v6 = vpop.permute.xlu1 %1774 }
 0x424   : > { %v2412_v34 = vpop.eup %2411  ;;  %v3517_v24 = vsel %vm329_vm3, %v1918_v18, -inf  ;;  %v1971_v35 = vsel %vm329_vm3, %v1918_v18, 0.0  ;;  %2415 = vpow2.f32 %v1850_v41  ;;  %vm1818_vm14 = vcmp.lt.f32.partialorder %v1802_v3, 16.0 }
 0x425   : > { %v2414_v27 = vpop.eup %2413  ;;  %v3524_v52 = vsel %vm329_vm3, %v1918_v18, inf  ;;  %v1917_v45 = vsel %vm1821_vm12, %v1901_v29, 0.0  ;;  %v1640_v40 = vmin.f32 %v1624_v26, 0.0  ;;  %2417 = vpow2.f32 %v1848_v4 }
 0x426   : > { %v1903_v44 = vmul.f32 %v2412_v34, %v3362_v22  ;;  %v1984_v21 = vsel %vm329_vm3, %v1917_v45, 0.0  ;;  %v1899_v57 = vmul.f32 %v2414_v27, %v3449_v59  ;;  %v3532_v11 = vsel %vm329_vm3, %v1917_v45, -inf }
 0x427   : > { %v1852_v47 = vmul.f32 1.442695, %v1640_v40  ;;  %v3535_v0 = vsel %vm329_vm3, %v1917_v45, inf  ;;  %v1846_v62 = vmul.f32 1.442695, %v1637_v55  ;;  %v1914_v53 = vsel %vm1818_vm14, %v1898_v10, 0.0 }
 0x428   : > { %v1915_v42 = vsel %vm1819_vm13, %v1899_v57, 0.0  ;;  %v3540_v9 = vsel %vm329_vm3, %v1914_v53, -inf  ;;  %v1968_v22 = vsel %vm329_vm3, %v1914_v53, 0.0  ;;  %v3544_v1 = vsel %vm329_vm3, %v1914_v53, inf }
 0x429   : > { %vm1827_vm0 = vcmp.lt.f32.partialorder %v3406_v56, 16.0  ;;  %v1947_v59 = vsel %vm329_vm3, %v1915_v42, -inf  ;;  %v1983_v33 = vsel %vm329_vm3, %v1915_v42, 0.0  ;;  %2419 = vpow2.f32 %v1852_v47  ;;  %v3570_v47 = vpop.permute.xlu2 %1784 }
 0x42a   : > { %vm1823_vm1 = vcmp.lt.f32.partialorder %v1807_v58, 16.0  ;;  %v2416_v3 = vpop.eup %2415  ;;  %v1985_v61 = vadd.f32 %v1984_v21, %v1983_v33  ;;  %2421 = vpow2.f32 %v1846_v62  ;;  %v1935_v16 = vmax.f32 %v3540_v9, %v3517_v24 }
 0x42b   : > { %v1970_v10 = vadd.f32 %v1969_v28, %v1968_v22  ;;  %v2418_v14 = vpop.eup %2417  ;;  %v2019_v54 = vsel %vm329_vm3, %v1915_v42, inf  ;;  %v1906_v41 = vmul.f32 %v2416_v3, %v3401_v13  ;;  %v2007_v55 = vmin.f32 %v3544_v1, %v3524_v52  ;;  %v3617_v2 = vpop.permute.xlu1 %1887 }
 0x42c   : > { %v1919_v58 = vsel %vm1823_vm1, %v1903_v44, 0.0  ;;  %v1905_v18 = vmul.f32 %v2418_v14, %v3499_v30  ;;  %v1453_v45 = vrot.slane %v3445_v25, 4  ;;  %v1477_v57 = vrot.slane %v3394_v32, 4  ;;  %v1765_v32 = vpop.permute.xlu0 %1764 }
 0x42d   : > { %v1972_v29 = vadd.f32 %v1971_v35, %v1970_v10  ;;  %v1949_v26 = vsel %vm329_vm3, %v1919_v58, -inf  ;;  %v1986_v4 = vsel %vm329_vm3, %v1919_v58, 0.0  ;;  %v2021_v27 = vsel %vm329_vm3, %v1919_v58, inf }
 0x42e   : > { %v1950_v34 = vmax.f32 %v1947_v59, %v1949_v26  ;;  %v1987_v28 = vadd.f32 %v1986_v4, %v1985_v61  ;;  %v1921_v40 = vsel %vm1825_vm15, %v1905_v18, 0.0  ;;  %v2022_v21 = vmin.f32 %v2019_v54, %v2021_v27 }
 0x42f   : > { %v1566_v35 = vsel %vm801_vm2, %v3386_v43, %v1565_v15  ;;  %v2420_v44 = vpop.eup %2419  ;;  %v3573_v62 = vsel %vm329_vm3, %v1921_v40, -inf  ;;  %v1988_v53 = vsel %vm329_vm3, %v1921_v40, 0.0  ;;  %v3577_v25 = vsel %vm329_vm3, %v1921_v40, inf }
 0x430   : > { %v1454_v51 = vsel %vm801_vm2, %v3390_v31, %v1453_v45  ;;  %v2422_v42 = vpop.eup %2421  ;;  %v1907_v23 = vmul.f32 %v2420_v44, %v3401_v13  ;;  %v1952_v43 = vmax.f32 %v3532_v11, %v3573_v62  ;;  %v2024_v15 = vmin.f32 %v3535_v0, %v3577_v25 }
 0x431   : > { %v1989_v22 = vadd.f32 %v1988_v53, %v1987_v28  ;;  %v1904_v59 = vmul.f32 %v2422_v42, %v3499_v30  ;;  %v3588_v33 = vperm.slane %v1454_v51, %v3003_v60  ;;  %v1478_v3 = vsel %vm801_vm2, %v3326_v38, %v1477_v57 }
 0x432   : > { %v3593_v31 = vperm.slane %v1566_v35, %v3003_v60  ;;  %v1923_v13 = vsel %vm1827_vm0, %v1907_v23, 0.0  ;;  %v3598_v61 = vperm.slane %v1478_v3, %v3003_v60  ;;  %v1589_v10 = vrot.slane %v3467_v63, 4 }
 0x433   : > { %v1810_v30 = vadd.f32 %v1765_v32, %v1710_v39  ;;  %v1953_v14 = vsel %vm329_vm3, %v1923_v13, -inf  ;;  %v1990_v54 = vsel %vm329_vm3, %v1923_v13, 0.0  ;;  %v2025_v38 = vsel %vm329_vm3, %v1923_v13, inf  ;;  %v2443_v13 = vld [vmem:[%s3841_s5] sm:$0x1] }
 0x434   : > { %v1920_v58 = vsel %vm1824_vm4, %v1904_v59, 0.0  ;;  %v3615_v63 = vmax.f32 %v1950_v34, %v1953_v14  ;;  %v3623_v49 = vmin.f32 %v2022_v21, %v2025_v38  ;;  %v1501_v28 = vrot.slane %v3588_v33, 4 }
 0x435   : > { %v3609_v56 = vsel %vm329_vm3, %v1920_v58, -inf  ;;  %v1973_v18 = vsel %vm329_vm3, %v1920_v58, 0.0  ;;  %v3613_v26 = vsel %vm329_vm3, %v1920_v58, inf  ;;  %v1590_v27 = vsel %vm801_vm2, %v3456_v37, %v1589_v10  ;;  %v1800_v37 = vpop.permute.xlu2 %1799 }
 0x436   : > { %v1937_v39 = vmax.f32 %v3472_v50, %v3609_v56  ;;  %v2009_v4 = vmin.f32 %v3505_v20, %v3613_v26  ;;  %v1613_v45 = vrot.slane %v3593_v31, 4  ;;  %vm1826_vm5 = vcmp.lt.f32.partialorder %v1810_v30, 16.0  ;;  %v1795_v30 = vpop.permute.xlu1 %1794 }
 0x437   : > { %v1974_v34 = vadd.f32 %v1973_v18, %v1972_v29  ;;  %v1502_v40 = vsel %vm801_vm2, %v3598_v61, %v1501_v28  ;;  %v1598_v57 = vperm.slane %v1590_v27, %v3003_v60  ;;  %v1922_v35 = vsel %vm1826_vm5, %v1906_v41, 0.0 }
 0x438   : > { %v1497_v44 = vrot.slane %v3461_v19, 4  ;;  %v1629_v53 = vmax.f32 %v1502_v40, -20.0  ;;  %v1938_v21 = vsel %vm329_vm3, %v1922_v35, -inf  ;;  %v1975_v51 = vsel %vm329_vm3, %v1922_v35, 0.0 }
 0x439   : > { %v2010_v32 = vsel %vm329_vm3, %v1922_v35, inf  ;;  %v1614_v42 = vsel %vm801_vm2, %v1598_v57, %v1613_v45  ;;  %v3640_v29 = vmax.f32 %v1935_v16, %v1938_v21  ;;  %v3642_v23 = vadd.f32 %v1975_v51, %v1974_v34 }
 0x43a   : > { %v3647_v60 = vmin.f32 %v2007_v55, %v2010_v32  ;;  %v1630_v19 = vmax.f32 %v1614_v42, -20.0  ;;  %v1645_v41 = vmin.f32 %v1629_v53, 0.0  ;;  %v1609_v59 = vrot.slane %v3496_v36, 4 }
 0x43b   : > { %v3650_v3 = vadd.f32 %v1990_v54, %v1989_v22  ;;  %v1656_v24 = vsub.f32 %v2443_v13, %v381_v48  ;;  %v1681_v9 = vmul.f32 %v3240_v17, %v3240_v17  ;;  %v1498_v52 = vsel %vm801_vm2, %v3464_v8, %v1497_v44 }
 0x43c   : > { %v1646_v1 = vmin.f32 %v1630_v19, 0.0  ;;  %v1862_v16 = vmul.f32 1.442695, %v1645_v41  ;;  %v1610_v36 = vsel %vm801_vm2, %v3489_v12, %v1609_v59  ;;  %v1625_v55 = vmax.f32 %v1498_v52, -20.0 }
 0x43d   : > { %v2591_v22 = vmov inf   ;;  %v1626_v10 = vmax.f32 %v1610_v36, -20.0  ;;  %v1611_v14 = vrot.slane %v1598_v57, 4  ;;  %v2592_v8 = vmov -inf   ;;  %v1896_v35 = vpop.permute.xlu2 %1895 }
 0x43e   : > { %330 = vst.msk [vmem:[#allocation2] sm:$0xff] %vm329_vm3, %v2591_v22  ;;  %v1864_v48 = vmul.f32 1.442695, %v1646_v1  ;;  %v1641_v17 = vmin.f32 %v1625_v55, 0.0  ;;  %v1713_v54 = vperm.slane %v1681_v9, 0  ;;  %2423 = vpow2.f32 %v1862_v16 }
 0x43f   : > { %331 = vst.msk [vmem:[#allocation2 + $0x8] sm:$0xff] %vm329_vm3, %v2591_v22  ;;  %v1642_v12 = vmin.f32 %v1626_v10, 0.0  ;;  %v1499_v38 = vrot.slane %v3598_v61, 4  ;;  %v1680_v58 = vmul.f32 %v1656_v24, %v1656_v24  ;;  %v1612_v7 = vsel %vm801_vm2, %v1611_v14, %v3593_v31  ;;  %v1790_v24 = vpop.permute.xlu0 %1789 }
 0x440   : > { %332 = vst.msk [vmem:[#allocation3] sm:$0xff] %vm329_vm3, %v2592_v8  ;;  %2425 = vpow2.f32 %v1864_v48  ;;  %v1854_v18 = vmul.f32 1.442695, %v1641_v17  ;;  %v1816_v27 = vadd.f32 %v1795_v30, %v1713_v54  ;;  %v1628_v45 = vmax.f32 %v1612_v7, -20.0  ;;  %v1892_v30 = vpop.permute.xlu1 %1891 }
 0x441   : > { %333 = vst.msk [vmem:[#allocation3 + $0x8] sm:$0xff] %vm329_vm3, %v2592_v8  ;;  %v1856_v28 = vmul.f32 1.442695, %v1642_v12  ;;  %v1500_v34 = vsel %vm801_vm2, %v1499_v38, %v3588_v33  ;;  %v1711_v57 = vperm.slane %v1679_v5, 0  ;;  %v1712_v53 = vperm.slane %v1680_v58, 0 }
 0x442   : > { %2427 = vpow2.f32 %v1854_v18  ;;  %v1627_v40 = vmax.f32 %v1500_v34, -20.0  ;;  %v1644_v44 = vmin.f32 %v1628_v45, 0.0  ;;  %v1817_v61 = vadd.f32 %v1800_v37, %v1713_v54  ;;  %v1966_v34 = vld [vmem:[#allocation4] sm:$0xff] }
 0x443   : > { %2429 = vpow2.f32 %v1856_v28  ;;  %v1813_v32 = vadd.f32 %v3521_v46, %v1711_v57  ;;  %vm1832_vm6 = vcmp.lt.f32.partialorder %v1816_v27, 16.0  ;;  %v1814_v19 = vadd.f32 %v3570_v47, %v1712_v53 }
 0x444   : > { %v1643_v21 = vmin.f32 %v1627_v40, 0.0  ;;  %v2424_v51 = vpop.eup %2423  ;;  %v1860_v31 = vmul.f32 1.442695, %v1644_v44  ;;  %v1812_v41 = vadd.f32 %v3552_v6, %v1711_v57  ;;  %vm1833_vm2 = vcmp.lt.f32.partialorder %v1817_v61, 16.0 }
 0x445   : > { %v1912_v33 = vmul.f32 %v2424_v51, %v1896_v35  ;;  %vm1829_vm7 = vcmp.lt.f32.partialorder %v1813_v32, 16.0  ;;  %vm1830_vm8 = vcmp.lt.f32.partialorder %v1814_v19, 16.0  ;;  %v1815_v16 = vadd.f32 %v1790_v24, %v1712_v53  ;;  %v2002_v24 = vld [vmem:[#allocation2] sm:$0xff] }
 0x446   : > { %v2426_v42 = vpop.eup %2425  ;;  %v1858_v59 = vmul.f32 1.442695, %v1643_v21  ;;  %2431 = vpow2.f32 %v1860_v31  ;;  %vm1828_vm9 = vcmp.lt.f32.partialorder %v1812_v41, 16.0 }
 0x447   : > { %v1913_v13 = vmul.f32 %v2426_v42, %v1896_v35  ;;  %v1928_v52 = vsel %vm1832_vm6, %v1912_v33, 0.0  ;;  %vm1831_vm10 = vcmp.lt.f32.partialorder %v1815_v16, 16.0  ;;  %v1930_v53 = vld [vmem:[#allocation3] sm:$0xff]  ;;  %v1967_v42 = vld [vmem:[#allocation4 + $0x8] sm:$0xff] }
 0x448   : > { %v2428_v9 = vpop.eup %2427  ;;  %2433 = vpow2.f32 %v1858_v59  ;;  %v1944_v55 = vsel %vm329_vm3, %v1928_v52, -inf  ;;  %v2016_v22 = vsel %vm329_vm3, %v1928_v52, inf  ;;  %v1981_v44 = vsel %vm329_vm3, %v1928_v52, 0.0  ;;  %v1931_v61 = vld [vmem:[#allocation3 + $0x8] sm:$0xff] }
 0x449   : > { %v2430_v37 = vpop.eup %2429  ;;  %v1929_v1 = vsel %vm1833_vm2, %v1913_v13, 0.0  ;;  %v1908_v46 = vmul.f32 %v2428_v9, %v3617_v2  ;;  %v2003_v9 = vld [vmem:[#allocation2 + $0x8] sm:$0xff] }
 0x44a   : > { %v1909_v47 = vmul.f32 %v2430_v37, %v3617_v2  ;;  %v1959_v6 = vsel %vm329_vm3, %v1929_v1, -inf  ;;  %v2031_v27 = vsel %vm329_vm3, %v1929_v1, inf  ;;  %v1996_v35 = vsel %vm329_vm3, %v1929_v1, 0.0 }
 0x44b   : > { %v1924_v36 = vsel %vm1828_vm9, %v1908_v46, 0.0 }
 0x44c   : > { %v1925_v10 = vsel %vm1829_vm7, %v1909_v47, 0.0  ;;  %v1940_v5 = vsel %vm329_vm3, %v1924_v36, -inf  ;;  %v1977_v48 = vsel %vm329_vm3, %v1924_v36, 0.0  ;;  %v2012_v17 = vsel %vm329_vm3, %v1924_v36, inf  ;;  %v2432_v14 = vpop.eup %2431 }
 0x44d   : > { %v1941_v2 = vmax.f32 %v1937_v39, %v1940_v5  ;;  %v1955_v8 = vsel %vm329_vm3, %v1925_v10, -inf  ;;  %v1978_v54 = vadd.f32 %v1977_v48, %v3642_v23  ;;  %v1992_v12 = vsel %vm329_vm3, %v1925_v10, 0.0 }
 0x44e   : > { %v2434_v38 = vpop.eup %2433  ;;  %v1956_v58 = vmax.f32 %v1952_v43, %v1955_v8  ;;  %v1993_v18 = vadd.f32 %v1992_v12, %v3650_v3  ;;  %v2013_v7 = vmin.f32 %v2009_v4, %v2012_v17  ;;  %v2027_v50 = vsel %vm329_vm3, %v1925_v10, inf }
 0x44f   : > { %v2028_v56 = vmin.f32 %v2024_v15, %v2027_v50  ;;  %v1945_v39 = vmax.f32 %v1941_v2, %v1944_v55  ;;  %v1910_v23 = vmul.f32 %v2434_v38, %v1892_v30  ;;  %v1911_v28 = vmul.f32 %v2432_v14, %v1892_v30 }
 0x450   : > { %v1960_v45 = vmax.f32 %v1956_v58, %v1959_v6  ;;  %v2017_v11 = vmin.f32 %v2013_v7, %v2016_v22 }
 0x451   : > { %v2032_v62 = vmin.f32 %v2028_v56, %v2031_v27  ;;  %v1926_v43 = vsel %vm1830_vm8, %v1910_v23, 0.0  ;;  %v1927_v3 = vsel %vm1831_vm10, %v1911_v28, 0.0 }
 0x452   : > { %v1942_v20 = vsel %vm329_vm3, %v1926_v43, -inf  ;;  %v1957_v26 = vsel %vm329_vm3, %v1927_v3, -inf  ;;  %v1979_v4 = vsel %vm329_vm3, %v1926_v43, 0.0  ;;  %v1994_v0 = vsel %vm329_vm3, %v1927_v3, 0.0 }
 0x453   : > { %v1943_v25 = vmax.f32 %v3640_v29, %v1942_v20  ;;  %v1958_v15 = vmax.f32 %v3615_v63, %v1957_v26  ;;  %v1980_v40 = vadd.f32 %v1979_v4, %v1978_v54  ;;  %v1995_v57 = vadd.f32 %v1994_v0, %v1993_v18 }
 0x454   : > { %v2014_v21 = vsel %vm329_vm3, %v1926_v43, inf  ;;  %v2029_v51 = vsel %vm329_vm3, %v1927_v3, inf }
 0x455   : > { %v1946_v32 = vmax.f32 %v1943_v25, %v1945_v39  ;;  %v1961_v31 = vmax.f32 %v1958_v15, %v1960_v45  ;;  %v1982_v19 = vadd.f32 %v1981_v44, %v1980_v40  ;;  %v1997_v29 = vadd.f32 %v1996_v35, %v1995_v57 }
 0x456   : > { %v2015_v63 = vmin.f32 %v3647_v60, %v2014_v21  ;;  %v2030_v41 = vmin.f32 %v3623_v49, %v2029_v51 }
 0x457   : > { %v1962_v33 = vmax.f32 %v1930_v53, %v1946_v32  ;;  %v1963_v59 = vmax.f32 %v1931_v61, %v1961_v31  ;;  %v1998_v13 = vadd.f32 %v1982_v19, %v1966_v34  ;;  %v1999_v52 = vadd.f32 %v1997_v29, %v1967_v42 }
 0x458   : > { %v2018_v37 = vmin.f32 %v2015_v63, %v2017_v11  ;;  %v2033_v1 = vmin.f32 %v2030_v41, %v2032_v62 }
 0x459   : > { %1964 = vst.msk [vmem:[#allocation3] sm:$0xff] %vm329_vm3, %v1962_v33 }
 0x45a   : > { %1965 = vst.msk [vmem:[#allocation3 + $0x8] sm:$0xff] %vm329_vm3, %v1963_v59  ;;  %v2034_v46 = vmin.f32 %v2002_v24, %v2018_v37  ;;  %v2035_v47 = vmin.f32 %v2003_v9, %v2033_v1 }
 0x45b   : > { %2000 = vst.msk [vmem:[#allocation4] sm:$0xff] %vm329_vm3, %v1998_v13 }
 0x45c   : > { %2001 = vst.msk [vmem:[#allocation4 + $0x8] sm:$0xff] %vm329_vm3, %v1999_v52 }
 0x45d   : > { %2036 = vst.msk [vmem:[#allocation2] sm:$0xff] %vm329_vm3, %v2034_v46 }
 0x45e   : > { %2037 = vst.msk [vmem:[#allocation2 + $0x8] sm:$0xff] %vm329_vm3, %v2035_v47 }
 0x460   : > { %v2043_v49 = vld [vmem:[#allocation3] sm:$0xff] }
 0x461   : > { %v2044_v16 = vld [vmem:[#allocation3 + $0x8] sm:$0xff] }
 0x462   : > { %v3722_v60 = vld [vmem:[#allocation4] sm:$0xff] }
 0x463   : > { %v3724_v6 = vld [vmem:[#allocation4 + $0x8] sm:$0xff]  ;;  %v2085_v36 = vadd.f32 1e-06, %v3722_v60 }
 0x464   : > { %v2041_v55 = vld [vmem:[#allocation2] sm:$0xff]  ;;  %v3728_v22 = vadd.f32 1e-06, %v3724_v6 }
 0x465   : > { %v2042_v10 = vld [vmem:[#allocation2 + $0x8] sm:$0xff]  ;;  %v2051_v5 = vsub.f32 %v2043_v49, %v2041_v55  ;;  %2435 = vrcp.f32 %v2085_v36  ;;  %v3733_v2 = vmul.f32 8.0, %v2041_v55  ;;  %v2096_v38 = vand.u32 2147483647, %v2085_v36 }
 0x466   : > { %v2052_v48 = vsub.f32 %v2044_v16, %v2042_v10  ;;  %2437 = vrcp.f32 %v3728_v22  ;;  %v3735_v8 = vmul.f32 8.0, %v2042_v10  ;;  %vm2092_vm11 = vweird.f32 %v2085_v36 }
 0x467   : > { %v2053_v17 = vadd.f32 1e-06, %v2051_v5  ;;  %v2049_v50 = vsub.f32 %v3722_v60, %v3733_v2  ;;  %v2098_v56 = vand.u32 2147483648, %v2085_v36  ;;  %vm2107_vm12 = vweird.f32 %v3728_v22 }
 0x468   : > { %v2054_v30 = vadd.f32 1e-06, %v2052_v48  ;;  %v2050_v23 = vsub.f32 %v3724_v6, %v3735_v8  ;;  %vm3750_vm13 = vcmp.eq.f32.partialorder %v2096_v38, 8.507059e+37  ;;  %v2113_v57 = vand.u32 2147483648, %v3728_v22 }
 0x469   : > { %2439 = vrcp.f32 %v2053_v17  ;;  %v2064_v11 = vand.u32 2147483647, %v2053_v17  ;;  %v2066_v62 = vand.u32 2147483648, %v2053_v17  ;;  %v2099_v53 = vor.u32 1.1754944e-38, %v2098_v56 }
 0x46a   : > { %2441 = vrcp.f32 %v2054_v30  ;;  %v2079_v25 = vand.u32 2147483647, %v2054_v30  ;;  %v2081_v15 = vand.u32 2147483648, %v2054_v30  ;;  %v2111_v61 = vand.u32 2147483647, %v3728_v22 }
 0x46b   : > { %v3731_v14 = vpop.eup %2435  ;;  %vm2060_vm5 = vweird.f32 %v2053_v17  ;;  %vm2075_vm6 = vweird.f32 %v2054_v30  ;;  %vm2065_vm8 = vcmp.eq.f32.partialorder %v2064_v11, 8.507059e+37  ;;  %v2067_v31 = vor.u32 1.1754944e-38, %v2066_v62 }
 0x46c   : > { %v2088_v54 = vmul.f32 %v3731_v14, %v2085_v36  ;;  %v3738_v12 = vpop.eup %2437  ;;  %vm2093_vm14 = vweird.f32 %v3731_v14  ;;  %vm2080_vm10 = vcmp.eq.f32.partialorder %v2079_v25, 8.507059e+37  ;;  %v2082_v63 = vor.u32 1.1754944e-38, %v2081_v15 }
 0x46d   : > { %v2103_v18 = vmul.f32 %v3738_v12, %v3728_v22  ;;  %vm2108_vm15 = vweird.f32 %v3738_v12  ;;  %vm3764_vm4 = vmor %vm2092_vm11, %vm2093_vm14  ;;  %v2114_v41 = vor.u32 1.1754944e-38, %v2113_v57  ;;  %vm2112_vm11 = vcmp.eq.f32.partialorder %v2111_v61, 8.507059e+37 }
 0x46e   : > { %v2089_v58 = vsub.f32 1.0, %v2088_v54  ;;  %vm3776_vm2 = vmor %vm2107_vm12, %vm2108_vm15 }
 0x46f   : > { %v2440_v7 = vpop.eup %2439  ;;  %v2104_v45 = vsub.f32 1.0, %v2103_v18 }
 0x470   : > { %v2442_v39 = vpop.eup %2441  ;;  %v2056_v28 = vmul.f32 %v2440_v7, %v2053_v17  ;;  %v2090_v27 = vmul.f32 %v3731_v14, %v2089_v58  ;;  %vm2061_vm0 = vweird.f32 %v2440_v7 }
 0x471   : > { %v2071_v43 = vmul.f32 %v2442_v39, %v2054_v30  ;;  %v2105_v4 = vmul.f32 %v3738_v12, %v2104_v45  ;;  %vm2076_vm1 = vweird.f32 %v2442_v39  ;;  %vm2062_vm7 = vmor %vm2060_vm5, %vm2061_vm0 }
 0x472   : > { %v2057_v20 = vsub.f32 1.0, %v2056_v28  ;;  %v2091_v26 = vadd.f32 %v3731_v14, %v2090_v27  ;;  %vm2077_vm9 = vmor %vm2075_vm6, %vm2076_vm1 }
 0x473   : > { %v2072_v0 = vsub.f32 1.0, %v2071_v43  ;;  %v2106_v40 = vadd.f32 %v3738_v12, %v2105_v4 }
 0x474   : > { %v2058_v34 = vmul.f32 %v2440_v7, %v2057_v20  ;;  %v2095_v51 = vsel %vm3764_vm4, %v3731_v14, %v2091_v26 }
 0x475   : > { %v2073_v35 = vmul.f32 %v2442_v39, %v2072_v0  ;;  %v2110_v19 = vsel %vm3776_vm2, %v3738_v12, %v2106_v40  ;;  %v2100_v13 = vsel %vm3750_vm13, %v2099_v53, %v2095_v51 }
 0x476   : > { %v2059_v21 = vadd.f32 %v2440_v7, %v2058_v34  ;;  %v2115_v52 = vsel %vm2112_vm11, %v2114_v41, %v2110_v19  ;;  %v2101_v1 = vmul.f32 %v2100_v13, %v3722_v60 }
 0x477   : > { %v2074_v42 = vadd.f32 %v2442_v39, %v2073_v35  ;;  %v2116_v47 = vmul.f32 %v2115_v52, %v3724_v6 }
 0x478   : > { %v2063_v29 = vsel %vm2062_vm7, %v2440_v7, %v2059_v21 }
 0x479   : > { %v2068_v33 = vsel %vm2065_vm8, %v2067_v31, %v2063_v29  ;;  %v2078_v59 = vsel %vm2077_vm9, %v2442_v39, %v2074_v42 }
 0x47a   : > { %v2069_v24 = vmul.f32 %v2068_v33, %v2049_v50  ;;  %v2083_v9 = vsel %vm2080_vm10, %v2082_v63, %v2078_v59 }
 0x47b   : > { %v2084_v37 = vmul.f32 %v2083_v9, %v2050_v23 }
 0x47c   : > { %v2117_v46 = vmul.f32 0.5, %v2069_v24 }
 0x47d   : > { %v2118_v49 = vmul.f32 0.5, %v2084_v37 }
 0x47e   : > { %v2119_v16 = vadd.f32 %v2117_v46, %v2101_v1 }
 0x47f   : > { %v2120_v36 = vadd.f32 %v2118_v49, %v2116_v47 }
 0x480   : > { %2121 = vst.msk [vmem:[%s323_s17] sm:$0xff] %vm329_vm3, %v2119_v16 }
 0x481   : > { %2122 = vst.msk [vmem:[%s323_s17 + $0x8] sm:$0xff] %vm329_vm3, %v2120_v36 }
 0x482   : > { %2501 = shalt.err (!%p2498_p11)
}
 0x483   : > { %s2593_s13 = smov 128   ;;  %s2594_s23 = smov 8  }
 0x484   : > { %2264 = dma.vmem_to_hbm [thread:$0]  (%p2700_p9), %s2139_s20, 256, %s2141_s9, %s2124_s10, %s2593_s13, %s2593_s13, %s2594_s23  }
 0x485 PF: > { %s3888_s12 = sld [smem:[#allocation11_spill]]  ;;  %p2275_p13 = scmp.ge.s32.totalorder %s2572_s8, 2 }
 0x487   : > { %p2271_p0 = pnand %p2275_p13, %p2706_p12 }
 0x489   : > { %p2272_p1 = pneg %p2271_p0 }
 0x48b   : > { %s2155_s16 = sand.u32 1, %s3888_s12  }
 0x48c   : > { %s2156_s17 = scalar_lea.sflag [#allocation7], %s2155_s16 }
 0x48d   : > { %2539 = dma.done.wait (%p2272_p1), %s2156_s17, 256  }
 0x48e   : > { %2541 = vsyncadd (%p2272_p1), %s2156_s17, 4294967040  ;;  %s23_s8 = sadd.s32 1, %s2572_s8   ;;  %s3890_s20 = sld [smem:[#allocation12_spill]] }
 0x48f   : > { %p20_p2 = scmp.ge.s32.totalorder %s23_s8, 8   ;;  %s3891_s21 = sld [smem:[#allocation13_spill]] }
 0x490   : > { %s3892_s24 = smov %s2548_s25  ;;  %s3893_s25 = smov %s2552_s26 }
 0x491   : > { %s3894_s26 = smov %s2713_s22  ;;  %s3895_s27 = smov %s2564_s29 }
 0x492   : > { %s3896_s28 = smov %s2568_s30  ;;  %22 = sbr.rel (!%p20_p2) target bundleno = 7 (0x7), region = 101 }
 0x494   : > { %s3897_s29 = smov %s3890_s20 }
 0x495   : > { %s3898_s30 = smov %s3891_s21 }
 0x497   :  { %2162 = vsyncpa [#allocation6], 1 }
 0x498   :  { %2164 = vsyncpa [#allocation6 + $0x1], 1 }
 0x499   :  { %2165 = vsyncpa [#allocation7], 1 }
 0x49a   :  { %2167 = vsyncpa [#allocation7 + $0x1], 1 }

</bundles_post_ra>
